<compile_context>
chip_gen: v7x
topology: tpu7x:2x2x1
jax: 0.10.0
libtpu: 0.0.40
codegen_flags: <defaults>
</compile_context>

<pallas_src>
import functools

import jax
import jax.numpy as jnp
from jax.experimental import pallas as pl
from jax.experimental.pallas import tpu as pltpu

INPUT_SIZE = 720
H1, H2, H3 = 660, 330, 111
NUM_CLASSES = 3
LANE = 128


def _round_up(n, m):
    return ((n + m - 1) // m) * m


def _cdiv(a, b):
    return (a + b - 1) // b


def _mlp_kernel(x_ref, w1_ref, b1_ref, w2_ref, b2_ref,
                w3_ref, b3_ref, w4_ref, b4_ref, o_ref):
    # Cast f32 x -> bf16 in-kernel (VPU has slack; saves a separate HBM pass over x).
    x = x_ref[...].astype(jnp.bfloat16)

    h = jnp.dot(x, w1_ref[...], preferred_element_type=jnp.float32)
    h = jnp.maximum(h + b1_ref[...], 0.0).astype(jnp.bfloat16)

    h = jnp.dot(h, w2_ref[...], preferred_element_type=jnp.float32)
    h = jnp.maximum(h + b2_ref[...], 0.0).astype(jnp.bfloat16)

    h = jnp.dot(h, w3_ref[...], preferred_element_type=jnp.float32)
    h = jnp.maximum(h + b3_ref[...], 0.0).astype(jnp.bfloat16)

    h = jnp.dot(h, w4_ref[...], preferred_element_type=jnp.float32)
    o_ref[...] = (h + b4_ref[...]).astype(o_ref.dtype)


def prepare_params(params, *, align_hidden=True):
    """One-time prep: bf16 weights, f32 biases, zero-padding.

    align_hidden=True pads hidden widths to multiples of 128 (660->768, 330->384,
    111->128) for full-vreg intermediates and unmasked stores (compute-bound regime).
    align_hidden=False keeps 660/330 and only lane-pads the last two layers
    (111->128, 3->128) — fewer weight bytes for tiny-batch, weight-DMA-bound serving.
    Zero padding is mathematically exact (ReLU(0)=0, zero rows/cols contribute 0).
    """
    if align_hidden:
        h1p, h2p = _round_up(H1, LANE), _round_up(H2, LANE)
    else:
        h1p, h2p = H1, H2
    h3p = _round_up(H3, LANE)
    outp = _round_up(NUM_CLASSES, LANE)

    def pad_w(a, rows, cols):
        return jnp.zeros((rows, cols), jnp.bfloat16).at[
            :a.shape[0], :a.shape[1]].set(a.astype(jnp.bfloat16))

    def pad_b(b, cols):
        return jnp.zeros((1, cols), jnp.float32).at[
            :, :b.shape[1]].set(b.astype(jnp.float32))

    return dict(
        w1=pad_w(params["w1"], INPUT_SIZE, h1p), b1=pad_b(params["b1"], h1p),
        w2=pad_w(params["w2"], h1p, h2p),        b2=pad_b(params["b2"], h2p),
        w3=pad_w(params["w3"], h2p, h3p),        b3=pad_b(params["b3"], h3p),
        w4=pad_w(params["w4"], h3p, outp),       b4=pad_b(params["b4"], outp),
    )


@functools.partial(jax.jit, static_argnames=("tm",))
def net_forward(x, prepped, *, tm=512):
    """x: (batch, INPUT_SIZE) f32.  prepped: output of prepare_params.  Returns (batch, 3) f32."""
    batch = x.shape[0]
    h1p = prepped["w1"].shape[1]
    h2p = prepped["w2"].shape[1]
    h3p = prepped["w3"].shape[1]
    outp = prepped["w4"].shape[1]

    # Batch tile:
    #  * large batch (>= 512): up to `tm` rows per tile, but never a single grid step —
    #    the "parallel" batch axis is what shards work across v7x's two TensorCores.
    #  * small batch: one tile covering the 16-row-padded batch (single step).
    if batch >= 512:
        TM = min(tm, _round_up(_cdiv(batch, 2), 256))
    else:
        TM = _round_up(max(batch, 1), 16)
    b_pad = _round_up(batch, TM)

    # Skip the pad copy entirely on the aligned-batch path (pure HBM traffic savings).
    x_p = x if b_pad == batch else jnp.pad(x, ((0, b_pad - batch), (0, 0)))

    grid = (b_pad // TM,)

    def batch_map(i):
        return (i, 0)

    def resident(i):        # same block every step -> weights stay in VMEM, paid once
        return (0, 0)

    in_specs = [
        pl.BlockSpec((TM, INPUT_SIZE), batch_map),   # x (f32, tiled over batch)
        pl.BlockSpec((INPUT_SIZE, h1p), resident),   # w1
        pl.BlockSpec((1, h1p), resident),            # b1
        pl.BlockSpec((h1p, h2p), resident),          # w2
        pl.BlockSpec((1, h2p), resident),            # b2
        pl.BlockSpec((h2p, h3p), resident),          # w3
        pl.BlockSpec((1, h3p), resident),            # b3
        pl.BlockSpec((h3p, outp), resident),         # w4
        pl.BlockSpec((1, outp), resident),           # b4
    ]
    out_spec = pl.BlockSpec((TM, outp), batch_map)   # lane-dense (128-wide) stores

    out = pl.pallas_call(
        _mlp_kernel,
        out_shape=jax.ShapeDtypeStruct((b_pad, outp), jnp.float32),
        grid=grid,
        in_specs=in_specs,
        out_specs=out_spec,
        compiler_params=pltpu.CompilerParams(
            dimension_semantics=("parallel",),
            vmem_limit_bytes=48 * 1024 * 1024),
    )(x_p, prepped["w1"], prepped["b1"], prepped["w2"], prepped["b2"],
      prepped["w3"], prepped["b3"], prepped["w4"], prepped["b4"])

    return out[:batch, :NUM_CLASSES]


def init_params(key):
    """Deterministic init mimicking nn.Linear default (U[-1/sqrt(fan_in), +1/sqrt(fan_in)])."""
    dims = [INPUT_SIZE, H1, H2, H3, NUM_CLASSES]
    params = {}
    for i in range(4):
        fan_in, fan_out = dims[i], dims[i + 1]
        key, kw, kb = jax.random.split(key, 3)
        bound = 1.0 / jnp.sqrt(float(fan_in))
        params[f"w{i+1}"] = jax.random.uniform(
            kw, (fan_in, fan_out), jnp.float32, -bound, bound)
        params[f"b{i+1}"] = jax.random.uniform(
            kb, (1, fan_out), jnp.float32, -bound, bound)
    return params


def _reference_bf16(x, params):
    """Same mixed precision as the kernel (bf16 operands, f32 accumulation) in plain JAX."""
    xb = x.astype(jnp.bfloat16)
    w1 = params["w1"].astype(jnp.bfloat16)
    w2 = params["w2"].astype(jnp.bfloat16)
    w3 = params["w3"].astype(jnp.bfloat16)
    w4 = params["w4"].astype(jnp.bfloat16)
    h = jnp.maximum(jnp.dot(xb, w1, preferred_element_type=jnp.float32)
                    + params["b1"], 0.0).astype(jnp.bfloat16)
    h = jnp.maximum(jnp.dot(h, w2, preferred_element_type=jnp.float32)
                    + params["b2"], 0.0).astype(jnp.bfloat16)
    h = jnp.maximum(jnp.dot(h, w3, preferred_element_type=jnp.float32)
                    + params["b3"], 0.0).astype(jnp.bfloat16)
    return jnp.dot(h, w4, preferred_element_type=jnp.float32) + params["b4"]


def _reference_f32(x, params):
    h = jnp.maximum(x @ params["w1"] + params["b1"], 0.0)
    h = jnp.maximum(h @ params["w2"] + params["b2"], 0.0)
    h = jnp.maximum(h @ params["w3"] + params["b3"], 0.0)
    return h @ params["w4"] + params["b4"]


if __name__ == "__main__":
    key = jax.random.PRNGKey(0)
    kx, kp = jax.random.split(key)
    batch = 8
    x = jax.random.normal(kx, (batch, INPUT_SIZE), jnp.float32)
    params = init_params(kp)

    ref_bf16 = _reference_bf16(x, params)
    ref_f32 = _reference_f32(x, params)

    # 128-aligned-hidden (throughput) variant.
    prepped = prepare_params(params, align_hidden=True)
    out = jax.block_until_ready(net_forward(x, prepped))
    assert out.shape == (batch, NUM_CLASSES)
    assert jnp.allclose(out, ref_bf16, atol=2e-3, rtol=2e-3), "mismatch vs bf16 reference"
    assert jnp.allclose(out, ref_f32, atol=5e-2, rtol=5e-2), "mismatch vs f32 reference"

    # Compact-weight (tiny-batch serving) variant.
    # TODO(synk): int8 (v5e/v6e) / fp8 (v7x) weight quantization would further halve the
    # weight DMA that dominates tiny-batch latency; not implemented here.
    prepped_c = prepare_params(params, align_hidden=False)
    out_c = jax.block_until_ready(net_forward(x, prepped_c))
    assert jnp.allclose(out_c, ref_bf16, atol=2e-3, rtol=2e-3), "mismatch (compact) vs bf16 ref"

    print("KERNEL_OK")
</pallas_src>

<mosaic_0001>
module attributes {stable_mosaic.version = 11 : i64} {
  func.func @_mlp_kernel(%arg0: i32, %arg1: memref<16x720xf32, #tpu.memory_space<vmem>>, %arg2: memref<720x768xbf16, #tpu.memory_space<vmem>>, %arg3: memref<1x768xf32, #tpu.memory_space<vmem>>, %arg4: memref<768x384xbf16, #tpu.memory_space<vmem>>, %arg5: memref<1x384xf32, #tpu.memory_space<vmem>>, %arg6: memref<384x128xbf16, #tpu.memory_space<vmem>>, %arg7: memref<1x128xf32, #tpu.memory_space<vmem>>, %arg8: memref<128x128xbf16, #tpu.memory_space<vmem>>, %arg9: memref<1x128xf32, #tpu.memory_space<vmem>>, %arg10: memref<16x128xf32, #tpu.memory_space<vmem>>) attributes {dimension_semantics = [#tpu.dimension_semantics<parallel>], iteration_bounds = array<i64: 1>, scalar_prefetch = 0 : i64, scratch_operands = 0 : i64, tpu.core_type = #tpu.core_type<tc>, window_params = [{transform_indices = @transform_0, window_bounds = array<i64: 16, 720>}, {pipeline_mode = #tpu.pipeline_mode<synchronous>, transform_indices = @transform_1, window_bounds = array<i64: 720, 768>}, {pipeline_mode = #tpu.pipeline_mode<synchronous>, transform_indices = @transform_2, window_bounds = array<i64: 1, 768>}, {pipeline_mode = #tpu.pipeline_mode<synchronous>, transform_indices = @transform_3, window_bounds = array<i64: 768, 384>}, {pipeline_mode = #tpu.pipeline_mode<synchronous>, transform_indices = @transform_4, window_bounds = array<i64: 1, 384>}, {pipeline_mode = #tpu.pipeline_mode<synchronous>, transform_indices = @transform_5, window_bounds = array<i64: 384, 128>}, {pipeline_mode = #tpu.pipeline_mode<synchronous>, transform_indices = @transform_6, window_bounds = array<i64: 1, 128>}, {pipeline_mode = #tpu.pipeline_mode<synchronous>, transform_indices = @transform_7, window_bounds = array<i64: 128, 128>}, {pipeline_mode = #tpu.pipeline_mode<synchronous>, transform_indices = @transform_8, window_bounds = array<i64: 1, 128>}, {transform_indices = @transform_9, window_bounds = array<i64: 16, 128>}]} {
    %c0 = arith.constant 0 : index
    %c0_0 = arith.constant 0 : index
    %0 = vector.load %arg1[%c0, %c0_0] : memref<16x720xf32, #tpu.memory_space<vmem>>, vector<16x720xf32>
    %1 = arith.truncf %0 : vector<16x720xf32> to vector<16x720xbf16>
    %c0_1 = arith.constant 0 : index
    %c0_2 = arith.constant 0 : index
    %2 = vector.load %arg2[%c0_1, %c0_2] : memref<720x768xbf16, #tpu.memory_space<vmem>>, vector<720x768xbf16>
    %cst = arith.constant dense<0.000000e+00> : vector<16x768xf32>
    %3 = tpu.matmul %1, %2, %cst {dimension_numbers = #tpu.dot_dimension_numbers<[1], [0], [0], [1], [0, 0, 1, 1], [], []>} : vector<16x720xbf16>, vector<720x768xbf16>, vector<16x768xf32> -> vector<16x768xf32>
    %c0_3 = arith.constant 0 : index
    %c0_4 = arith.constant 0 : index
    %4 = vector.load %arg3[%c0_3, %c0_4] : memref<1x768xf32, #tpu.memory_space<vmem>>, vector<1x768xf32>
    %5 = vector.broadcast %4 : vector<1x768xf32> to vector<16x768xf32>
    %6 = arith.addf %3, %5 : vector<16x768xf32>
    %cst_5 = arith.constant 0.000000e+00 : f32
    %7 = vector.broadcast %cst_5 : f32 to vector<16x768xf32>
    %8 = arith.maximumf %6, %7 : vector<16x768xf32>
    %9 = arith.truncf %8 : vector<16x768xf32> to vector<16x768xbf16>
    %c0_6 = arith.constant 0 : index
    %c0_7 = arith.constant 0 : index
    %10 = vector.load %arg4[%c0_6, %c0_7] : memref<768x384xbf16, #tpu.memory_space<vmem>>, vector<768x384xbf16>
    %cst_8 = arith.constant dense<0.000000e+00> : vector<16x384xf32>
    %11 = tpu.matmul %9, %10, %cst_8 {dimension_numbers = #tpu.dot_dimension_numbers<[1], [0], [0], [1], [0, 0, 1, 1], [], []>} : vector<16x768xbf16>, vector<768x384xbf16>, vector<16x384xf32> -> vector<16x384xf32>
    %c0_9 = arith.constant 0 : index
    %c0_10 = arith.constant 0 : index
    %12 = vector.load %arg5[%c0_9, %c0_10] : memref<1x384xf32, #tpu.memory_space<vmem>>, vector<1x384xf32>
    %13 = vector.broadcast %12 : vector<1x384xf32> to vector<16x384xf32>
    %14 = arith.addf %11, %13 : vector<16x384xf32>
    %cst_11 = arith.constant 0.000000e+00 : f32
    %15 = vector.broadcast %cst_11 : f32 to vector<16x384xf32>
    %16 = arith.maximumf %14, %15 : vector<16x384xf32>
    %17 = arith.truncf %16 : vector<16x384xf32> to vector<16x384xbf16>
    %c0_12 = arith.constant 0 : index
    %c0_13 = arith.constant 0 : index
    %18 = vector.load %arg6[%c0_12, %c0_13] : memref<384x128xbf16, #tpu.memory_space<vmem>>, vector<384x128xbf16>
    %cst_14 = arith.constant dense<0.000000e+00> : vector<16x128xf32>
    %19 = tpu.matmul %17, %18, %cst_14 {dimension_numbers = #tpu.dot_dimension_numbers<[1], [0], [0], [1], [0, 0, 1, 1], [], []>} : vector<16x384xbf16>, vector<384x128xbf16>, vector<16x128xf32> -> vector<16x128xf32>
    %c0_15 = arith.constant 0 : index
    %c0_16 = arith.constant 0 : index
    %20 = vector.load %arg7[%c0_15, %c0_16] : memref<1x128xf32, #tpu.memory_space<vmem>>, vector<1x128xf32>
    %21 = vector.broadcast %20 : vector<1x128xf32> to vector<16x128xf32>
    %22 = arith.addf %19, %21 : vector<16x128xf32>
    %cst_17 = arith.constant 0.000000e+00 : f32
    %23 = vector.broadcast %cst_17 : f32 to vector<16x128xf32>
    %24 = arith.maximumf %22, %23 : vector<16x128xf32>
    %25 = arith.truncf %24 : vector<16x128xf32> to vector<16x128xbf16>
    %c0_18 = arith.constant 0 : index
    %c0_19 = arith.constant 0 : index
    %26 = vector.load %arg8[%c0_18, %c0_19] : memref<128x128xbf16, #tpu.memory_space<vmem>>, vector<128x128xbf16>
    %cst_20 = arith.constant dense<0.000000e+00> : vector<16x128xf32>
    %27 = tpu.matmul %25, %26, %cst_20 {dimension_numbers = #tpu.dot_dimension_numbers<[1], [0], [0], [1], [0, 0, 1, 1], [], []>} : vector<16x128xbf16>, vector<128x128xbf16>, vector<16x128xf32> -> vector<16x128xf32>
    %c0_21 = arith.constant 0 : index
    %c0_22 = arith.constant 0 : index
    %28 = vector.load %arg9[%c0_21, %c0_22] : memref<1x128xf32, #tpu.memory_space<vmem>>, vector<1x128xf32>
    %29 = vector.broadcast %28 : vector<1x128xf32> to vector<16x128xf32>
    %30 = arith.addf %27, %29 : vector<16x128xf32>
    %c0_23 = arith.constant 0 : index
    %c0_24 = arith.constant 0 : index
    %31 = vector.load %arg10[%c0_23, %c0_24] : memref<16x128xf32, #tpu.memory_space<vmem>>, vector<16x128xf32>
    tpu.vector_store %arg10[%c0_23, %c0_24], %30 {strides = array<i32>} : memref<16x128xf32, #tpu.memory_space<vmem>>, vector<16x128xf32>,
    return
  }
  func.func @transform_0(%arg0: i32) -> (i32, i32) {
    %c0_i32 = arith.constant 0 : i32
    %c0_i32_0 = arith.constant 0 : i32
    return %arg0, %c0_i32 : i32, i32
  }
  func.func @transform_1(%arg0: i32) -> (i32, i32) {
    %c0_i32 = arith.constant 0 : i32
    %c0_i32_0 = arith.constant 0 : i32
    %c0_i32_1 = arith.constant 0 : i32
    return %c0_i32, %c0_i32_0 : i32, i32
  }
  func.func @transform_2(%arg0: i32) -> (i32, i32) {
    %c0_i32 = arith.constant 0 : i32
    %c0_i32_0 = arith.constant 0 : i32
    %c0_i32_1 = arith.constant 0 : i32
    return %c0_i32, %c0_i32_0 : i32, i32
  }
  func.func @transform_3(%arg0: i32) -> (i32, i32) {
    %c0_i32 = arith.constant 0 : i32
    %c0_i32_0 = arith.constant 0 : i32
    %c0_i32_1 = arith.constant 0 : i32
    return %c0_i32, %c0_i32_0 : i32, i32
  }
  func.func @transform_4(%arg0: i32) -> (i32, i32) {
    %c0_i32 = arith.constant 0 : i32
    %c0_i32_0 = arith.constant 0 : i32
    %c0_i32_1 = arith.constant 0 : i32
    return %c0_i32, %c0_i32_0 : i32, i32
  }
  func.func @transform_5(%arg0: i32) -> (i32, i32) {
    %c0_i32 = arith.constant 0 : i32
    %c0_i32_0 = arith.constant 0 : i32
    %c0_i32_1 = arith.constant 0 : i32
    return %c0_i32, %c0_i32_0 : i32, i32
  }
  func.func @transform_6(%arg0: i32) -> (i32, i32) {
    %c0_i32 = arith.constant 0 : i32
    %c0_i32_0 = arith.constant 0 : i32
    %c0_i32_1 = arith.constant 0 : i32
    return %c0_i32, %c0_i32_0 : i32, i32
  }
  func.func @transform_7(%arg0: i32) -> (i32, i32) {
    %c0_i32 = arith.constant 0 : i32
    %c0_i32_0 = arith.constant 0 : i32
    %c0_i32_1 = arith.constant 0 : i32
    return %c0_i32, %c0_i32_0 : i32, i32
  }
  func.func @transform_8(%arg0: i32) -> (i32, i32) {
    %c0_i32 = arith.constant 0 : i32
    %c0_i32_0 = arith.constant 0 : i32
    %c0_i32_1 = arith.constant 0 : i32
    return %c0_i32, %c0_i32_0 : i32, i32
  }
  func.func @transform_9(%arg0: i32) -> (i32, i32) {
    %c0_i32 = arith.constant 0 : i32
    %c0_i32_0 = arith.constant 0 : i32
    return %arg0, %c0_i32 : i32, i32
  }
}

</mosaic_0001>

<bundles_post_ra>
// kernel: net_forward.1
= control target key start
LH: loop header
LB: loop body
LE: loop exit
PB: predicated region body
PF: predicated region fallthrough
CT: control target
= control target key end

     0   :  { %14 = vsyncpa [#allocation3], 0  ;;  %s5640_s0 = inlined_call_operand.vmem [shape: f32[16,720], index: 0, kind: input, shape index: {}]   ;;  %s5641_s1 = inlined_call_operand.hbm [shape: bf16[720,768], index: 1, kind: input, shape index: {}]   ;;  %s5642_s2 = inlined_call_operand.hbm [shape: f32[1,768], index: 2, kind: input, shape index: {}]   ;;  %s5643_s3 = inlined_call_operand.hbm [shape: bf16[768,384], index: 3, kind: input, shape index: {}]   ;;  %s5644_s4 = inlined_call_operand.hbm [shape: f32[1,384], index: 4, kind: input, shape index: {}]   ;;  %s5645_s5 = inlined_call_operand.hbm [shape: bf16[384,128], index: 5, kind: input, shape index: {}]   ;;  %s5646_s6 = inlined_call_operand.hbm [shape: f32[1,128], index: 6, kind: input, shape index: {}]   ;;  %s5647_s7 = inlined_call_operand.hbm [shape: bf16[128,128], index: 7, kind: input, shape index: {}]   ;;  %s5648_s8 = inlined_call_operand.hbm [shape: f32[1,128], index: 8, kind: input, shape index: {}]   ;;  %s5649_s9 = inlined_call_operand.vmem [shape: f32[16,128], index: 9, kind: output, shape index: {}]  }
   0x1   :  { %15 = vsyncpa [#allocation5], 0 }
   0x2   :  { %16 = vsyncpa [#allocation8], 0 }
   0x3   :  { %17 = vsyncpa [#allocation11], 0 }
   0x4   :  { %18 = vsyncpa [#allocation14], 0  ;;  %s5334_s30 = smov [#allocation4]   ;;  %s5335_s11 = smov [#allocation7]  }
   0x5   :  { %s39_s10 = sshll.u32 %s5334_s30, 4  ;;  %s61_s12 = sshll.u32 %s5335_s11, 4  ;;  %s40_s10 = int_to_ptr.vmem [resolvable:$true] %s39_s10  ;;  %s62_s12 = int_to_ptr.vmem [resolvable:$true] %s61_s12 }
   0x6   :  { %s5148_s15 = scalar_lea.hbm %s5642_s2, 96 }
   0x7   :  { %p5149_p0 = scmp.ne.s32.totalorder %s5642_s2, %s5148_s15  ;;  %p5152_p1 = scmp.lt.u32.totalorder %s5148_s15, %s5642_s2 }
   0x9   :  { %p5154_p2 = pnand %p5152_p1, %p5149_p0 }
   0xb   :  { %5157 = shalt.err (!%p5154_p2)
}
   0xc   :  { %s5158_s20 = scalar_lea.vmem %s40_s10, 96  ;;  %p5163_p4 = scmp.lt.s32.totalorder %s40_s10, %s40_s10 }
   0xd   :  { %p5159_p3 = scmp.ne.s32.totalorder %s40_s10, %s5158_s20  ;;  %p5164_p5 = scmp.lt.s32.totalorder %s5158_s20, %s5158_s20 }
   0xf   :  { %p5165_p6 = por %p5164_p5, %p5163_p4 }
  0x11   :  { %p5166_p7 = pnand %p5165_p6, %p5159_p3 }
  0x13   :  { %5169 = shalt.err (!%p5166_p7)
}
  0x14   :  { %42 = dma.hbm_to_vmem [thread:$0]  %s5642_s2, 96, %s40_s10, [#allocation5]  }
  0x15   :  { %s5170_s25 = scalar_lea.hbm %s5644_s4, 48 }
  0x16   :  { %p5171_p8 = scmp.ne.s32.totalorder %s5644_s4, %s5170_s25  ;;  %p5174_p9 = scmp.lt.u32.totalorder %s5170_s25, %s5644_s4 }
  0x18   :  { %p5176_p10 = pnand %p5174_p9, %p5171_p8 }
  0x1a   :  { %5179 = shalt.err (!%p5176_p10)
}
  0x1b   :  { %s5180_s30 = scalar_lea.vmem %s62_s12, 48  ;;  %s5184_s11 = scalar_lea.vmem %s62_s12, 64 }
  0x1c   :  { %p5181_p11 = scmp.ne.s32.totalorder %s62_s12, %s5180_s30  ;;  %p5185_p12 = scmp.lt.s32.totalorder %s62_s12, %s62_s12 }
  0x1d   :  { %p5186_p13 = scmp.lt.s32.totalorder %s5184_s11, %s5180_s30 }
  0x1f   :  { %p5187_p0 = por %p5186_p13, %p5185_p12 }
  0x21   :  { %p5188_p1 = pnand %p5187_p0, %p5181_p11 }
  0x23   :  { %5191 = shalt.err (!%p5188_p1)
}
  0x24   :  { %64 = dma.hbm_to_vmem [thread:$0]  %s5644_s4, 48, %s62_s12, [#allocation8]  }
  0x25   :  { %s5336_s13 = smov [#allocation10]   ;;  %s5337_s15 = smov [#allocation2]  }
  0x26   :  { %s83_s14 = sshll.u32 %s5336_s13, 4  ;;  %s26_s16 = sshll.u32 %s5337_s15, 4  ;;  %s84_s14 = int_to_ptr.vmem [resolvable:$true] %s83_s14  ;;  %s5424_s16 = int_to_ptr.vmem [resolvable:$true] %s26_s16 }
  0x27   :  { %s5192_s19 = scalar_lea.hbm %s5646_s6, 16 }
  0x28   :  { %p5193_p2 = scmp.ne.s32.totalorder %s5646_s6, %s5192_s19  ;;  %p5196_p3 = scmp.lt.u32.totalorder %s5192_s19, %s5646_s6 }
  0x2a   :  { %p5198_p4 = pnand %p5196_p3, %p5193_p2 }
  0x2c   :  { %5201 = shalt.err (!%p5198_p4)
}
  0x2d   :  { %s5202_s4 = scalar_lea.vmem %s84_s14, 16  ;;  %s5206_s12 = scalar_lea.vmem %s84_s14, 32 }
  0x2e   :  { %p5203_p5 = scmp.ne.s32.totalorder %s84_s14, %s5202_s4  ;;  %p5207_p6 = scmp.lt.s32.totalorder %s84_s14, %s84_s14 }
  0x2f   :  { %p5208_p7 = scmp.lt.s32.totalorder %s5206_s12, %s5202_s4 }
  0x31   :  { %p5209_p8 = por %p5208_p7, %p5207_p6 }
  0x33   :  { %p5210_p9 = pnand %p5209_p8, %p5203_p5 }
  0x35   :  { %5213 = shalt.err (!%p5210_p9)
}
  0x36   :  { %86 = dma.hbm_to_vmem [thread:$0]  %s5646_s6, 16, %s84_s14, [#allocation11]  }
  0x37   :  { %s5214_s28 = scalar_lea.hbm %s5641_s1, 34560 }
  0x38   :  { %p5215_p10 = scmp.ne.s32.totalorder %s5641_s1, %s5214_s28  ;;  %p5218_p11 = scmp.lt.u32.totalorder %s5214_s28, %s5641_s1 }
  0x3a   :  { %p5220_p12 = pnand %p5218_p11, %p5215_p10 }
  0x3c   :  { %5223 = shalt.err (!%p5220_p12)
}
  0x3d   :  { %s5224_s10 = scalar_lea.vmem %s5424_s16, 34560  ;;  %p5229_p0 = scmp.lt.s32.totalorder %s5424_s16, %s5424_s16 }
  0x3e   :  { %p5225_p13 = scmp.ne.s32.totalorder %s5424_s16, %s5224_s10  ;;  %p5230_p1 = scmp.lt.s32.totalorder %s5224_s10, %s5224_s10 }
  0x40   :  { %p5231_p2 = por %p5230_p1, %p5229_p0 }
  0x42   :  { %p5232_p3 = pnand %p5231_p2, %p5225_p13 }
  0x44   :  { %5235 = shalt.err (!%p5232_p3)
}
  0x45   :  { %s5338_s6 = smov 384   ;;  %s5339_s13 = smov 24  }
  0x46   :  { %32 = dma.hbm_to_vmem [thread:$0]  %s5641_s1, 34560, %s5424_s16, [#allocation3], %s5338_s6, %s5338_s6, %s5339_s13  }
  0x47   :  { %s5340_s17 = smov [#allocation6]   ;;  %s5236_s21 = scalar_lea.hbm %s5643_s3, 18432 }
  0x48   :  { %s48_s18 = sshll.u32 %s5340_s17, 4  ;;  %p5237_p4 = scmp.ne.s32.totalorder %s5643_s3, %s5236_s21  ;;  %s49_s18 = int_to_ptr.vmem [resolvable:$true] %s48_s18 }
  0x49   :  { %p5240_p5 = scmp.lt.u32.totalorder %s5236_s21, %s5643_s3 }
  0x4b   :  { %p5242_p6 = pnand %p5240_p5, %p5237_p4 }
  0x4d   :  { %5245 = shalt.err (!%p5242_p6)
}
  0x4e   :  { %s5246_s24 = scalar_lea.vmem %s49_s18, 18432  ;;  %p5251_p8 = scmp.lt.s32.totalorder %s49_s18, %s49_s18 }
  0x4f   :  { %p5247_p7 = scmp.ne.s32.totalorder %s49_s18, %s5246_s24  ;;  %p5252_p9 = scmp.lt.s32.totalorder %s5246_s24, %s5246_s24 }
  0x51   :  { %p5253_p10 = por %p5252_p9, %p5251_p8 }
  0x53   :  { %p5254_p11 = pnand %p5253_p10, %p5247_p7 }
  0x55   :  { %5257 = shalt.err (!%p5254_p11)
}
  0x56   :  { %s5341_s1 = smov 192   ;;  %s5342_s16 = smov 12  }
  0x57   :  { %54 = dma.hbm_to_vmem [thread:$0]  %s5643_s3, 18432, %s49_s18, [#allocation5], %s5341_s1, %s5341_s1, %s5342_s16  }
  0x58   :  { %s5343_s27 = smov [#allocation9]   ;;  %s5258_s11 = scalar_lea.hbm %s5645_s5, 3072 }
  0x59   :  { %s70_s28 = sshll.u32 %s5343_s27, 4  ;;  %p5259_p12 = scmp.ne.s32.totalorder %s5645_s5, %s5258_s11  ;;  %s71_s28 = int_to_ptr.vmem [resolvable:$true] %s70_s28 }
  0x5a   :  { %p5262_p13 = scmp.lt.u32.totalorder %s5258_s11, %s5645_s5 }
  0x5c   :  { %p5264_p0 = pnand %p5262_p13, %p5259_p12 }
  0x5e   :  { %5267 = shalt.err (!%p5264_p0)
}
  0x5f   :  { %s5268_s14 = scalar_lea.vmem %s71_s28, 3072  ;;  %p5273_p2 = scmp.lt.s32.totalorder %s71_s28, %s71_s28 }
  0x60   :  { %p5269_p1 = scmp.ne.s32.totalorder %s71_s28, %s5268_s14  ;;  %p5274_p3 = scmp.lt.s32.totalorder %s5268_s14, %s5268_s14 }
  0x62   :  { %p5275_p4 = por %p5274_p3, %p5273_p2 }
  0x64   :  { %p5276_p5 = pnand %p5275_p4, %p5269_p1 }
  0x66   :  { %5279 = shalt.err (!%p5276_p5)
}
  0x67   :  { %s5344_s3 = smov 64   ;;  %s5345_s15 = smov 4  }
  0x68   :  { %76 = dma.hbm_to_vmem [thread:$0]  %s5645_s5, 3072, %s71_s28, [#allocation8], %s5344_s3, %s5344_s3, %s5345_s15  }
  0x69   :  { %s5346_s19 = smov [#allocation12]   ;;  %s5347_s21 = smov [#allocation13]  }
  0x6a   :  { %s92_s20 = sshll.u32 %s5346_s19, 4  ;;  %s105_s22 = sshll.u32 %s5347_s21, 4  ;;  %s93_s20 = int_to_ptr.vmem [resolvable:$true] %s92_s20  ;;  %s106_s22 = int_to_ptr.vmem [resolvable:$true] %s105_s22 }
  0x6b   :  { %s5280_s12 = scalar_lea.hbm %s5647_s7, 1024 }
  0x6c   :  { %p5281_p6 = scmp.ne.s32.totalorder %s5647_s7, %s5280_s12  ;;  %p5284_p7 = scmp.lt.u32.totalorder %s5280_s12, %s5647_s7 }
  0x6e   :  { %p5286_p8 = pnand %p5284_p7, %p5281_p6 }
  0x70   :  { %5289 = shalt.err (!%p5286_p8)
}
  0x71   :  { %s5290_s5 = scalar_lea.vmem %s93_s20, 1024  ;;  %p5295_p10 = scmp.lt.s32.totalorder %s93_s20, %s93_s20 }
  0x72   :  { %p5291_p9 = scmp.ne.s32.totalorder %s93_s20, %s5290_s5  ;;  %p5296_p11 = scmp.lt.s32.totalorder %s5290_s5, %s5290_s5 }
  0x74   :  { %p5297_p12 = por %p5296_p11, %p5295_p10 }
  0x76   :  { %p5298_p13 = pnand %p5297_p12, %p5291_p9 }
  0x78   :  { %5301 = shalt.err (!%p5298_p13)
}
  0x79   :  { %98 = dma.hbm_to_vmem [thread:$0]  %s5647_s7, 1024, %s93_s20, [#allocation11], %s5344_s3, %s5344_s3, %s5345_s15  }
  0x7a   :  { %s5302_s30 = scalar_lea.hbm %s5648_s8, 16 }
  0x7b   :  { %p5303_p0 = scmp.ne.s32.totalorder %s5648_s8, %s5302_s30  ;;  %p5306_p1 = scmp.lt.u32.totalorder %s5302_s30, %s5648_s8 }
  0x7d   :  { %p5308_p2 = pnand %p5306_p1, %p5303_p0 }
  0x7f   :  { %5311 = shalt.err (!%p5308_p2)
}
  0x80   :  { %s5312_s13 = scalar_lea.vmem %s106_s22, 16  ;;  %s5316_s14 = scalar_lea.vmem %s106_s22, 32 }
  0x81   :  { %p5313_p3 = scmp.ne.s32.totalorder %s106_s22, %s5312_s13  ;;  %p5317_p4 = scmp.lt.s32.totalorder %s106_s22, %s106_s22 }
  0x82   :  { %p5318_p5 = scmp.lt.s32.totalorder %s5316_s14, %s5312_s13 }
  0x84   :  { %p5319_p6 = por %p5318_p5, %p5317_p4 }
  0x86   :  { %p5320_p7 = pnand %p5319_p6, %p5313_p3 }
  0x88   :  { %5323 = shalt.err (!%p5320_p7)
}
  0x89   :  { %108 = dma.hbm_to_vmem [thread:$0]  %s5648_s8, 16, %s106_s22, [#allocation14]  }
  0x8a   :  { %5324 = dma.done.wait [#allocation3], 34560  }
  0x8b   :  { %5325 = vsyncadd [#allocation3], 4294932736 }
  0x8c   :  { %5326 = dma.done.wait [#allocation5], 18528  }
  0x8d   :  { %5327 = vsyncadd [#allocation5], 4294948768 }
  0x8e   :  { %5328 = dma.done.wait [#allocation8], 3120  }
  0x8f   :  { %5329 = vsyncadd [#allocation8], 4294964176 }
  0x90   :  { %5330 = dma.done.wait [#allocation11], 1040  }
  0x91   :  { %5331 = vsyncadd [#allocation11], 4294966256 }
  0x92   :  { %5332 = dma.done.wait [#allocation14], 16  }
  0x93   :  { %5333 = vsyncadd [#allocation14], 4294967280  ;;  %v4519_v0 = vld [vmem:[#allocation2 + $0x4] ss:$24 sps:$4 sm:$0xff]   ;;  %v4523_v2 = vld [vmem:[#allocation2] ss:$24 sps:$4 sm:$0xff]  }
  0x94   :  { %v4521_v1 = vld [vmem:[#allocation2 + $0xc] ss:$24 sps:$4 sm:$0xff]   ;;  %1808 = vmatprep.subr.bf16.mxu0 %v4519_v0  ;;  %v4524_v3 = vld [vmem:[#allocation2 + $0x8] ss:$24 sps:$4 sm:$0xff]   ;;  %v4527_v5 = vld [vmem:[#allocation2 + $0x3c] ss:$24 sps:$4 sm:$0xff]  }
  0x95   :  { %1937 = vmatprep.subr.bf16.mxu1 %v4521_v1  ;;  %v4525_v4 = vld [vmem:[#allocation2 + $0x34] ss:$24 sps:$4 sm:$0xff]   ;;  %1809 = vmatpush1.bf16.msra.mxu0 %v4523_v2  ;;  %v4529_v6 = vld [vmem:[#allocation2 + $0x30] ss:$24 sps:$4 sm:$0xff]   ;;  %v4531_v8 = vld [vmem:[#allocation2 + $0x64] ss:$24 sps:$4 sm:$0xff]  }
  0x96   :  { %1938 = vmatpush1.bf16.msra.mxu1 %v4524_v3  ;;  %1810 = vmatprep.subr.bf16.mxu0 %v4525_v4  ;;  %v4530_v7 = vld [vmem:[#allocation2 + $0x38] ss:$24 sps:$4 sm:$0xff]   ;;  %v4533_v9 = vld [vmem:[#allocation2 + $0x6c] ss:$24 sps:$4 sm:$0xff]   ;;  %v4536_v11 = vld [vmem:[#allocation2 + $0x68] ss:$24 sps:$4 sm:$0xff]  }
  0x97   :  { %1939 = vmatprep.subr.bf16.mxu1 %v4527_v5  ;;  %v4535_v10 = vld [vmem:[#allocation2 + $0x60] ss:$24 sps:$4 sm:$0xff]   ;;  %v4537_v12 = vld [vmem:[#allocation2 + $0x94] ss:$24 sps:$4 sm:$0xff]   ;;  %v4541_v14 = vld [vmem:[#allocation2 + $0x90] ss:$24 sps:$4 sm:$0xff]  }
  0x98   :  { %v4539_v13 = vld [vmem:[#allocation2 + $0x9c] ss:$24 sps:$4 sm:$0xff]   ;;  %v4542_v15 = vld [vmem:[#allocation2 + $0x98] ss:$24 sps:$4 sm:$0xff]   ;;  %v4545_v17 = vld [vmem:[#allocation2 + $0xcc] ss:$24 sps:$4 sm:$0xff]  }
  0x99   :  { %1811 = vmatpush1.bf16.msra.mxu0 %v4529_v6  ;;  %v4543_v16 = vld [vmem:[#allocation2 + $0xc4] ss:$24 sps:$4 sm:$0xff]   ;;  %v4547_v18 = vld [vmem:[#allocation2 + $0xc0] ss:$24 sps:$4 sm:$0xff]   ;;  %v4549_v20 = vld [vmem:[#allocation2 + $0xf4] ss:$24 sps:$4 sm:$0xff]  }
  0x9a   :  { %1940 = vmatpush1.bf16.msra.mxu1 %v4530_v7  ;;  %1812 = vmatprep.subr.bf16.mxu0 %v4531_v8  ;;  %v4548_v19 = vld [vmem:[#allocation2 + $0xc8] ss:$24 sps:$4 sm:$0xff]   ;;  %v4551_v21 = vld [vmem:[#allocation2 + $0xfc] ss:$24 sps:$4 sm:$0xff]   ;;  %v4554_v23 = vld [vmem:[#allocation2 + $0xf8] ss:$24 sps:$4 sm:$0xff]  }
  0x9b   :  { %1941 = vmatprep.subr.bf16.mxu1 %v4533_v9  ;;  %v4553_v22 = vld [vmem:[#allocation2 + $0xf0] ss:$24 sps:$4 sm:$0xff]   ;;  %v4555_v24 = vld [vmem:[#allocation2 + $0x124] ss:$24 sps:$4 sm:$0xff]   ;;  %v4559_v26 = vld [vmem:[#allocation2 + $0x120] ss:$24 sps:$4 sm:$0xff]  }
  0x9c   :  { %v4557_v25 = vld [vmem:[#allocation2 + $0x12c] ss:$24 sps:$4 sm:$0xff]   ;;  %v4560_v27 = vld [vmem:[#allocation2 + $0x128] ss:$24 sps:$4 sm:$0xff]   ;;  %v4563_v29 = vld [vmem:[#allocation2 + $0x15c] ss:$24 sps:$4 sm:$0xff]  }
  0x9d   :  { %1813 = vmatpush1.bf16.msra.mxu0 %v4535_v10  ;;  %v4561_v28 = vld [vmem:[#allocation2 + $0x154] ss:$24 sps:$4 sm:$0xff]   ;;  %v4565_v30 = vld [vmem:[#allocation2 + $0x150] ss:$24 sps:$4 sm:$0xff]   ;;  %v4567_v32 = vld [vmem:[#allocation2 + $0x184] ss:$24 sps:$4 sm:$0xff]  }
  0x9e   :  { %1942 = vmatpush1.bf16.msra.mxu1 %v4536_v11  ;;  %1814 = vmatprep.subr.bf16.mxu0 %v4537_v12  ;;  %v4566_v31 = vld [vmem:[#allocation2 + $0x158] ss:$24 sps:$4 sm:$0xff]   ;;  %v4569_v33 = vld [vmem:[#allocation2 + $0x18c] ss:$24 sps:$4 sm:$0xff]   ;;  %v4572_v35 = vld [vmem:[#allocation2 + $0x188] ss:$24 sps:$4 sm:$0xff]  }
  0x9f   :  { %1943 = vmatprep.subr.bf16.mxu1 %v4539_v13  ;;  %v4571_v34 = vld [vmem:[#allocation2 + $0x180] ss:$24 sps:$4 sm:$0xff]   ;;  %v4573_v36 = vld [vmem:[#allocation2 + $0x1b4] ss:$24 sps:$4 sm:$0xff]   ;;  %v4577_v38 = vld [vmem:[#allocation2 + $0x1b0] ss:$24 sps:$4 sm:$0xff]  }
  0xa0   :  { %v4575_v37 = vld [vmem:[#allocation2 + $0x1bc] ss:$24 sps:$4 sm:$0xff]   ;;  %v4578_v39 = vld [vmem:[#allocation2 + $0x1b8] ss:$24 sps:$4 sm:$0xff]   ;;  %v4581_v41 = vld [vmem:[#allocation2 + $0x1ec] ss:$24 sps:$4 sm:$0xff]  }
  0xa1   :  { %1815 = vmatpush1.bf16.msra.mxu0 %v4541_v14  ;;  %v4579_v40 = vld [vmem:[#allocation2 + $0x1e4] ss:$24 sps:$4 sm:$0xff]   ;;  %v4583_v42 = vld [vmem:[#allocation2 + $0x1e0] ss:$24 sps:$4 sm:$0xff]   ;;  %v4585_v44 = vld [vmem:[#allocation2 + $0x214] ss:$24 sps:$4 sm:$0xff]  }
  0xa2   :  { %1944 = vmatpush1.bf16.msra.mxu1 %v4542_v15  ;;  %1816 = vmatprep.subr.bf16.mxu0 %v4543_v16  ;;  %v4584_v43 = vld [vmem:[#allocation2 + $0x1e8] ss:$24 sps:$4 sm:$0xff]   ;;  %v4587_v45 = vld [vmem:[#allocation2 + $0x21c] ss:$24 sps:$4 sm:$0xff]   ;;  %v4590_v49 = vld [vmem:[#allocation2 + $0x218] ss:$24 sps:$4 sm:$0xff]  }
  0xa3   :  { %1945 = vmatprep.subr.bf16.mxu1 %v4545_v17  ;;  %v135_v46 = vld [vmem:[%s5640_s0 + $0x8] sm:$0xff]  ;;  %v141_v47 = vld [vmem:[%s5640_s0 + $0x38] sm:$0xff]  ;;  %v134_v4 = vld [vmem:[%s5640_s0] sm:$0xff]  ;;  %vm1804_vm0 = vcmask 654336   ;;  %vm5349_vm1 = vmmov 0  }
  0xa4   :  { %v4589_v48 = vld [vmem:[#allocation2 + $0x210] ss:$24 sps:$4 sm:$0xff]   ;;  %v5509_v50 = vpack.c.bf16 %v141_v47, %v135_v46  ;;  %v4591_v51 = vld [vmem:[#allocation2 + $0x244] ss:$24 sps:$4 sm:$0xff]   ;;  %v4595_v53 = vld [vmem:[#allocation2 + $0x240] ss:$24 sps:$4 sm:$0xff]  }
  0xa5   :  { %1817 = vmatpush1.bf16.msra.mxu0 %v4547_v18  ;;  %v4593_v52 = vld [vmem:[#allocation2 + $0x24c] ss:$24 sps:$4 sm:$0xff]   ;;  %v4596_v54 = vld [vmem:[#allocation2 + $0x248] ss:$24 sps:$4 sm:$0xff]   ;;  %v4599_v56 = vld [vmem:[#allocation2 + $0x27c] ss:$24 sps:$4 sm:$0xff]  }
  0xa6   :  { %1946 = vmatpush1.bf16.msra.mxu1 %v4548_v19  ;;  %1818 = vmatprep.subr.bf16.mxu0 %v4549_v20  ;;  %v4597_v55 = vld [vmem:[#allocation2 + $0x274] ss:$24 sps:$4 sm:$0xff]   ;;  %v4601_v57 = vld [vmem:[#allocation2 + $0x270] ss:$24 sps:$4 sm:$0xff]   ;;  %v4603_v59 = vld [vmem:[#allocation2 + $0x2a4] ss:$24 sps:$4 sm:$0xff]  }
  0xa7   :  { %1947 = vmatprep.subr.bf16.mxu1 %v4551_v21  ;;  %1840 = vmatprep.mubr.bf16.mxu0 %v5509_v50  ;;  %v4602_v58 = vld [vmem:[#allocation2 + $0x278] ss:$24 sps:$4 sm:$0xff]   ;;  %v4605_v60 = vld [vmem:[#allocation2 + $0x2ac] ss:$24 sps:$4 sm:$0xff]   ;;  %v4608_v62 = vld [vmem:[#allocation2 + $0x2a8] ss:$24 sps:$4 sm:$0xff]  }
  0xa8   :  { %1969 = vmatprep.mubr.bf16.mxu1 %v5509_v50  ;;  %v4607_v61 = vld [vmem:[#allocation2 + $0x2a0] ss:$24 sps:$4 sm:$0xff]   ;;  %v4609_v63 = vld [vmem:[#allocation2 + $0x2d4] ss:$24 sps:$4 sm:$0xff]   ;;  %v4613_v1 = vld [vmem:[#allocation2 + $0x2d0] ss:$24 sps:$4 sm:$0xff]  }
  0xa9   :  { %1819 = vmatpush1.bf16.msra.mxu0 %v4553_v22  ;;  %v4611_v0 = vld [vmem:[#allocation2 + $0x2dc] ss:$24 sps:$4 sm:$0xff]   ;;  %v4614_v2 = vld [vmem:[#allocation2 + $0x2d8] ss:$24 sps:$4 sm:$0xff]   ;;  %v4620_v6 = vld [vmem:[#allocation2 + $0x30c] ss:$24 sps:$4 sm:$0xff]  }
  0xaa   :  { %1948 = vmatpush1.bf16.msra.mxu1 %v4554_v23  ;;  %1820 = vmatprep.subr.bf16.mxu0 %v4555_v24  ;;  %v4617_v3 = vld [vmem:[#allocation2 + $0x304] ss:$24 sps:$4 sm:$0xff]   ;;  %v140_v5 = vld [vmem:[%s5640_s0 + $0x30] sm:$0xff]  ;;  %v4615_v7 = vld [vmem:[#allocation2 + $0x300] ss:$24 sps:$4 sm:$0xff]  }
  0xab   :  { %1949 = vmatprep.subr.bf16.mxu1 %v4557_v25  ;;  %v4618_v8 = vld [vmem:[#allocation2 + $0x308] ss:$24 sps:$4 sm:$0xff]   ;;  %v5519_v9 = vpack.c.bf16 %v140_v5, %v134_v4  ;;  %v4623_v10 = vld [vmem:[#allocation2 + $0x334] ss:$24 sps:$4 sm:$0xff]   ;;  %v4624_v13 = vld [vmem:[#allocation2 + $0x338] ss:$24 sps:$4 sm:$0xff]  }
  0xac   :  { %v4626_v11 = vld [vmem:[#allocation2 + $0x33c] ss:$24 sps:$4 sm:$0xff]   ;;  %v4621_v12 = vld [vmem:[#allocation2 + $0x330] ss:$24 sps:$4 sm:$0xff]   ;;  %v4632_v15 = vld [vmem:[#allocation2 + $0x36c] ss:$24 sps:$4 sm:$0xff]  }
  0xad   :  { %1821 = vmatpush1.bf16.msra.mxu0 %v4559_v26  ;;  %v4629_v14 = vld [vmem:[#allocation2 + $0x364] ss:$24 sps:$4 sm:$0xff]   ;;  %v4627_v16 = vld [vmem:[#allocation2 + $0x360] ss:$24 sps:$4 sm:$0xff]   ;;  %v4635_v18 = vld [vmem:[#allocation2 + $0x394] ss:$24 sps:$4 sm:$0xff]  }
  0xae   :  { %1950 = vmatpush1.bf16.msra.mxu1 %v4560_v27  ;;  %1822 = vmatprep.subr.bf16.mxu0 %v4561_v28  ;;  %v4630_v17 = vld [vmem:[#allocation2 + $0x368] ss:$24 sps:$4 sm:$0xff]   ;;  %v4638_v19 = vld [vmem:[#allocation2 + $0x39c] ss:$24 sps:$4 sm:$0xff]   ;;  %v4636_v21 = vld [vmem:[#allocation2 + $0x398] ss:$24 sps:$4 sm:$0xff]  }
  0xaf   :  { %1951 = vmatprep.subr.bf16.mxu1 %v4563_v29  ;;  %v4633_v20 = vld [vmem:[#allocation2 + $0x390] ss:$24 sps:$4 sm:$0xff]   ;;  %v4641_v22 = vld [vmem:[#allocation2 + $0x3c4] ss:$24 sps:$4 sm:$0xff]   ;;  %v4639_v24 = vld [vmem:[#allocation2 + $0x3c0] ss:$24 sps:$4 sm:$0xff]  }
  0xb0   :  { %v4644_v23 = vld [vmem:[#allocation2 + $0x3cc] ss:$24 sps:$4 sm:$0xff]   ;;  %v4642_v25 = vld [vmem:[#allocation2 + $0x3c8] ss:$24 sps:$4 sm:$0xff]   ;;  %v4650_v27 = vld [vmem:[#allocation2 + $0x3fc] ss:$24 sps:$4 sm:$0xff]  }
  0xb1   :  { %1823 = vmatpush1.bf16.msra.mxu0 %v4565_v30  ;;  %v4647_v26 = vld [vmem:[#allocation2 + $0x3f4] ss:$24 sps:$4 sm:$0xff]   ;;  %v4645_v28 = vld [vmem:[#allocation2 + $0x3f0] ss:$24 sps:$4 sm:$0xff]   ;;  %v4653_v30 = vld [vmem:[#allocation2 + $0x424] ss:$24 sps:$4 sm:$0xff]  }
  0xb2   :  { %1952 = vmatpush1.bf16.msra.mxu1 %v4566_v31  ;;  %1824 = vmatprep.subr.bf16.mxu0 %v4567_v32  ;;  %v4648_v29 = vld [vmem:[#allocation2 + $0x3f8] ss:$24 sps:$4 sm:$0xff]   ;;  %v4656_v31 = vld [vmem:[#allocation2 + $0x42c] ss:$24 sps:$4 sm:$0xff]   ;;  %v4674_v46 = vld [vmem:[#allocation2 + $0x4bc] ss:$24 sps:$4 sm:$0xff]  }
  0xb3   :  { %1953 = vmatprep.subr.bf16.mxu1 %v4569_v33  ;;  %v137_v32 = vld [vmem:[%s5640_s0 + $0x18] sm:$0xff]  ;;  %v143_v33 = vld [vmem:[%s5640_s0 + $0x48] sm:$0xff] }
  0xb4   :  { %v4669_v47 = vld [vmem:[#allocation2 + $0x4b0] ss:$24 sps:$4 sm:$0xff]   ;;  %v4699_v4 = vld [vmem:[#allocation2 + $0x5a0] ss:$24 sps:$4 sm:$0xff]  }
  0xb5   :  { %1825 = vmatpush1.bf16.msra.mxu0 %v4571_v34  ;;  %v4651_v34 = vld [vmem:[#allocation2 + $0x420] ss:$24 sps:$4 sm:$0xff]  }
  0xb6   :  { %1954 = vmatpush1.bf16.msra.mxu1 %v4572_v35  ;;  %1826 = vmatprep.subr.bf16.mxu0 %v4573_v36  ;;  %v4654_v35 = vld [vmem:[#allocation2 + $0x428] ss:$24 sps:$4 sm:$0xff]   ;;  %v5529_v36 = vpack.c.bf16 %v143_v33, %v137_v32  ;;  %v4732_v32 = vld [vmem:[#allocation2 + $0x698] ss:$24 sps:$4 sm:$0xff]   ;;  %v4737_v33 = vld [vmem:[#allocation2 + $0x6c4] ss:$24 sps:$4 sm:$0xff]  }
  0xb7   :  { %1955 = vmatprep.subr.bf16.mxu1 %v4575_v37  ;;  %v4659_v37 = vld [vmem:[#allocation2 + $0x454] ss:$24 sps:$4 sm:$0xff]   ;;  %v4702_v5 = vld [vmem:[#allocation2 + $0x5a8] ss:$24 sps:$4 sm:$0xff]  }
  0xb9   :  { %1827 = vmatpush1.bf16.msra.mxu0 %v4577_v38  ;;  %v4662_v38 = vld [vmem:[#allocation2 + $0x45c] ss:$24 sps:$4 sm:$0xff]  }
  0xba   :  { %1956 = vmatpush1.bf16.msra.mxu1 %v4578_v39  ;;  %1828 = vmatprep.subr.bf16.mxu0 %v4579_v40  ;;  %v4657_v39 = vld [vmem:[#allocation2 + $0x450] ss:$24 sps:$4 sm:$0xff]  }
  0xbb   :  { %1957 = vmatprep.subr.bf16.mxu1 %v4581_v41  ;;  %v4660_v40 = vld [vmem:[#allocation2 + $0x458] ss:$24 sps:$4 sm:$0xff]   ;;  %v4665_v41 = vld [vmem:[#allocation2 + $0x484] ss:$24 sps:$4 sm:$0xff]  }
  0xbd   :  { %1829 = vmatpush1.bf16.msra.mxu0 %v4583_v42  ;;  %v4668_v42 = vld [vmem:[#allocation2 + $0x48c] ss:$24 sps:$4 sm:$0xff]  }
  0xbe   :  { %1958 = vmatpush1.bf16.msra.mxu1 %v4584_v43  ;;  %1830 = vmatprep.subr.bf16.mxu0 %v4585_v44  ;;  %v4663_v43 = vld [vmem:[#allocation2 + $0x480] ss:$24 sps:$4 sm:$0xff]  }
  0xbf   :  { %1959 = vmatprep.subr.bf16.mxu1 %v4587_v45  ;;  %v4666_v44 = vld [vmem:[#allocation2 + $0x488] ss:$24 sps:$4 sm:$0xff]   ;;  %v4671_v45 = vld [vmem:[#allocation2 + $0x4b4] ss:$24 sps:$4 sm:$0xff]  }
  0xc1   :  { %1831 = vmatpush1.bf16.msra.mxu0 %v4589_v48  ;;  %v4672_v48 = vld [vmem:[#allocation2 + $0x4b8] ss:$24 sps:$4 sm:$0xff]  }
  0xc2   :  { %1960 = vmatpush1.bf16.msra.mxu1 %v4590_v49  ;;  %1832 = vmatprep.subr.bf16.mxu0 %v4591_v51  ;;  %v4677_v49 = vld [vmem:[#allocation2 + $0x4e4] ss:$24 sps:$4 sm:$0xff]  }
  0xc3   :  { %1961 = vmatprep.subr.bf16.mxu1 %v4593_v52  ;;  %v4680_v51 = vld [vmem:[#allocation2 + $0x4ec] ss:$24 sps:$4 sm:$0xff]   ;;  %v4675_v52 = vld [vmem:[#allocation2 + $0x4e0] ss:$24 sps:$4 sm:$0xff]  }
  0xc5   :  { %1833 = vmatpush1.bf16.msra.mxu0 %v4595_v53  ;;  %v4678_v53 = vld [vmem:[#allocation2 + $0x4e8] ss:$24 sps:$4 sm:$0xff]  }
  0xc6   :  { %1962 = vmatpush1.bf16.msra.mxu1 %v4596_v54  ;;  %1834 = vmatprep.subr.bf16.mxu0 %v4597_v55  ;;  %v4683_v54 = vld [vmem:[#allocation2 + $0x514] ss:$24 sps:$4 sm:$0xff]  }
  0xc7   :  { %1963 = vmatprep.subr.bf16.mxu1 %v4599_v56  ;;  %v4686_v55 = vld [vmem:[#allocation2 + $0x51c] ss:$24 sps:$4 sm:$0xff]   ;;  %v4681_v56 = vld [vmem:[#allocation2 + $0x510] ss:$24 sps:$4 sm:$0xff]  }
  0xc9   :  { %1835 = vmatpush1.bf16.msra.mxu0 %v4601_v57  ;;  %v4684_v57 = vld [vmem:[#allocation2 + $0x518] ss:$24 sps:$4 sm:$0xff]  }
  0xca   :  { %1964 = vmatpush1.bf16.msra.mxu1 %v4602_v58  ;;  %1836 = vmatprep.subr.bf16.mxu0 %v4603_v59  ;;  %v4689_v58 = vld [vmem:[#allocation2 + $0x544] ss:$24 sps:$4 sm:$0xff]  }
  0xcb   :  { %1965 = vmatprep.subr.bf16.mxu1 %v4605_v60  ;;  %v4692_v59 = vld [vmem:[#allocation2 + $0x54c] ss:$24 sps:$4 sm:$0xff]   ;;  %v4687_v60 = vld [vmem:[#allocation2 + $0x540] ss:$24 sps:$4 sm:$0xff]  }
  0xcd   :  { %1837 = vmatpush1.bf16.msra.mxu0 %v4607_v61  ;;  %v4690_v61 = vld [vmem:[#allocation2 + $0x548] ss:$24 sps:$4 sm:$0xff]  }
  0xce   :  { %1966 = vmatpush1.bf16.msra.mxu1 %v4608_v62  ;;  %1838 = vmatprep.subr.bf16.mxu0 %v4609_v63  ;;  %v4695_v62 = vld [vmem:[#allocation2 + $0x574] ss:$24 sps:$4 sm:$0xff]  }
  0xcf   :  { %1967 = vmatprep.subr.bf16.mxu1 %v4611_v0  ;;  %v4698_v63 = vld [vmem:[#allocation2 + $0x57c] ss:$24 sps:$4 sm:$0xff]   ;;  %v4693_v0 = vld [vmem:[#allocation2 + $0x570] ss:$24 sps:$4 sm:$0xff]  }
  0xd1   :  { %1839 = vmatpush1.bf16.msra.mxu0 %v4613_v1  ;;  %v4696_v1 = vld [vmem:[#allocation2 + $0x578] ss:$24 sps:$4 sm:$0xff]  }
  0xd2   :  { %1968 = vmatpush1.bf16.msra.mxu1 %v4614_v2  ;;  %1851 = vmatprep.subr.bf16.mxu0 %v4617_v3  ;;  %v4701_v2 = vld [vmem:[#allocation2 + $0x5a4] ss:$24 sps:$4 sm:$0xff]  }
  0xd3   :  { %1980 = vmatprep.subr.bf16.mxu1 %v4620_v6  ;;  %v4704_v3 = vld [vmem:[#allocation2 + $0x5ac] ss:$24 sps:$4 sm:$0xff]  }
  0xd4   :  { %1841 = vmatmul.mubr.bf16.vlgmr.msra.gmra.mrb[0].mxu0 %v5519_v9  ;;  %v4707_v6 = vld [vmem:[#allocation2 + $0x5d4] ss:$24 sps:$4 sm:$0xff]  }
  0xd5   :  { %1970 = vmatmul.mubr.bf16.vlgmr.msra.gmra.mrb[0].mxu1 %v5519_v9  ;;  %1852 = vmatpush1.bf16.msra.mxu0 %v4615_v7  ;;  %v4710_v7 = vld [vmem:[#allocation2 + $0x5dc] ss:$24 sps:$4 sm:$0xff]  }
  0xd6   :  { %1981 = vmatpush1.bf16.msra.mxu1 %v4618_v8  ;;  %1853 = vmatprep.subr.bf16.mxu0 %v4623_v10  ;;  %v4705_v8 = vld [vmem:[#allocation2 + $0x5d0] ss:$24 sps:$4 sm:$0xff]  }
  0xd7   :  { %1982 = vmatprep.subr.bf16.mxu1 %v4626_v11  ;;  %1883 = vmatprep.mubr.bf16.mxu0 %v5529_v36  ;;  %v4708_v10 = vld [vmem:[#allocation2 + $0x5d8] ss:$24 sps:$4 sm:$0xff]   ;;  %v4713_v11 = vld [vmem:[#allocation2 + $0x604] ss:$24 sps:$4 sm:$0xff]  }
  0xd8   :  { %2012 = vmatprep.mubr.bf16.mxu1 %v5529_v36 }
  0xd9   :  { %1854 = vmatpush1.bf16.msra.mxu0 %v4621_v12  ;;  %v136_v12 = vld [vmem:[%s5640_s0 + $0x10] sm:$0xff] }
  0xda   :  { %1983 = vmatpush1.bf16.msra.mxu1 %v4624_v13  ;;  %1855 = vmatprep.subr.bf16.mxu0 %v4629_v14  ;;  %v142_v13 = vld [vmem:[%s5640_s0 + $0x40] sm:$0xff] }
  0xdb   :  { %1984 = vmatprep.subr.bf16.mxu1 %v4632_v15  ;;  %v4716_v14 = vld [vmem:[#allocation2 + $0x60c] ss:$24 sps:$4 sm:$0xff]   ;;  %v4711_v15 = vld [vmem:[#allocation2 + $0x600] ss:$24 sps:$4 sm:$0xff]  }
  0xdd   :  { %1856 = vmatpush1.bf16.msra.mxu0 %v4627_v16  ;;  %v4714_v16 = vld [vmem:[#allocation2 + $0x608] ss:$24 sps:$4 sm:$0xff]  }
  0xde   :  { %1985 = vmatpush1.bf16.msra.mxu1 %v4630_v17  ;;  %1857 = vmatprep.subr.bf16.mxu0 %v4635_v18  ;;  %v5539_v17 = vpack.c.bf16 %v142_v13, %v136_v12  ;;  %v139_v18 = vld [vmem:[%s5640_s0 + $0x28] sm:$0xff]  ;;  %v4794_v13 = vld [vmem:[#allocation2 + $0x44] ss:$24 sps:$4 sm:$0xff]  }
  0xdf   :  { %1986 = vmatprep.subr.bf16.mxu1 %v4638_v19  ;;  %v145_v19 = vld [vmem:[%s5640_s0 + $0x58] sm:$0xff]  ;;  %v4789_v12 = vld [vmem:[#allocation2 + $0x10] ss:$24 sps:$4 sm:$0xff]  }
  0xe1   :  { %1858 = vmatpush1.bf16.msra.mxu0 %v4633_v20  ;;  %v4719_v20 = vld [vmem:[#allocation2 + $0x634] ss:$24 sps:$4 sm:$0xff]  }
  0xe2   :  { %1987 = vmatpush1.bf16.msra.mxu1 %v4636_v21  ;;  %1859 = vmatprep.subr.bf16.mxu0 %v4641_v22  ;;  %v4722_v21 = vld [vmem:[#allocation2 + $0x63c] ss:$24 sps:$4 sm:$0xff]   ;;  %v5547_v22 = vpack.c.bf16 %v145_v19, %v139_v18  ;;  %v4798_v19 = vld [vmem:[#allocation2 + $0xa0] ss:$24 sps:$4 sm:$0xff]  }
  0xe3   :  { %1988 = vmatprep.subr.bf16.mxu1 %v4644_v23  ;;  %v4717_v23 = vld [vmem:[#allocation2 + $0x630] ss:$24 sps:$4 sm:$0xff]   ;;  %v4800_v18 = vld [vmem:[#allocation2 + $0xa4] ss:$24 sps:$4 sm:$0xff]  }
  0xe5   :  { %1860 = vmatpush1.bf16.msra.mxu0 %v4639_v24  ;;  %v4720_v24 = vld [vmem:[#allocation2 + $0x638] ss:$24 sps:$4 sm:$0xff]  }
  0xe6   :  { %1989 = vmatpush1.bf16.msra.mxu1 %v4642_v25  ;;  %1861 = vmatprep.subr.bf16.mxu0 %v4647_v26  ;;  %v4725_v25 = vld [vmem:[#allocation2 + $0x664] ss:$24 sps:$4 sm:$0xff]  }
  0xe7   :  { %1990 = vmatprep.subr.bf16.mxu1 %v4650_v27  ;;  %v4728_v26 = vld [vmem:[#allocation2 + $0x66c] ss:$24 sps:$4 sm:$0xff]   ;;  %v4723_v27 = vld [vmem:[#allocation2 + $0x660] ss:$24 sps:$4 sm:$0xff]  }
  0xe9   :  { %1862 = vmatpush1.bf16.msra.mxu0 %v4645_v28  ;;  %v4726_v28 = vld [vmem:[#allocation2 + $0x668] ss:$24 sps:$4 sm:$0xff]  }
  0xea   :  { %1991 = vmatpush1.bf16.msra.mxu1 %v4648_v29  ;;  %1863 = vmatprep.subr.bf16.mxu0 %v4653_v30  ;;  %v4731_v29 = vld [vmem:[#allocation2 + $0x694] ss:$24 sps:$4 sm:$0xff]  }
  0xeb   :  { %1992 = vmatprep.subr.bf16.mxu1 %v4656_v31  ;;  %v4734_v30 = vld [vmem:[#allocation2 + $0x69c] ss:$24 sps:$4 sm:$0xff]   ;;  %v4729_v31 = vld [vmem:[#allocation2 + $0x690] ss:$24 sps:$4 sm:$0xff]  }
  0xed   :  { %1864 = vmatpush1.bf16.msra.mxu0 %v4651_v34  ;;  %v4740_v34 = vld [vmem:[#allocation2 + $0x6cc] ss:$24 sps:$4 sm:$0xff]  }
  0xee   :  { %1993 = vmatpush1.bf16.msra.mxu1 %v4654_v35  ;;  %1865 = vmatprep.subr.bf16.mxu0 %v4659_v37  ;;  %v4735_v35 = vld [vmem:[#allocation2 + $0x6c0] ss:$24 sps:$4 sm:$0xff]  }
  0xef   :  { %1994 = vmatprep.subr.bf16.mxu1 %v4662_v38  ;;  %v4738_v37 = vld [vmem:[#allocation2 + $0x6c8] ss:$24 sps:$4 sm:$0xff]   ;;  %v4743_v38 = vld [vmem:[#allocation2 + $0x6f4] ss:$24 sps:$4 sm:$0xff]  }
  0xf1   :  { %1866 = vmatpush1.bf16.msra.mxu0 %v4657_v39  ;;  %v4746_v39 = vld [vmem:[#allocation2 + $0x6fc] ss:$24 sps:$4 sm:$0xff]  }
  0xf2   :  { %1995 = vmatpush1.bf16.msra.mxu1 %v4660_v40  ;;  %1867 = vmatprep.subr.bf16.mxu0 %v4665_v41  ;;  %v4741_v40 = vld [vmem:[#allocation2 + $0x6f0] ss:$24 sps:$4 sm:$0xff]  }
  0xf3   :  { %1996 = vmatprep.subr.bf16.mxu1 %v4668_v42  ;;  %v4744_v41 = vld [vmem:[#allocation2 + $0x6f8] ss:$24 sps:$4 sm:$0xff]   ;;  %v4749_v42 = vld [vmem:[#allocation2 + $0x724] ss:$24 sps:$4 sm:$0xff]  }
  0xf5   :  { %1868 = vmatpush1.bf16.msra.mxu0 %v4663_v43  ;;  %v4752_v43 = vld [vmem:[#allocation2 + $0x72c] ss:$24 sps:$4 sm:$0xff]  }
  0xf6   :  { %1997 = vmatpush1.bf16.msra.mxu1 %v4666_v44  ;;  %1869 = vmatprep.subr.bf16.mxu0 %v4671_v45  ;;  %v4747_v44 = vld [vmem:[#allocation2 + $0x720] ss:$24 sps:$4 sm:$0xff]  }
  0xf7   :  { %1998 = vmatprep.subr.bf16.mxu1 %v4674_v46  ;;  %v4750_v45 = vld [vmem:[#allocation2 + $0x728] ss:$24 sps:$4 sm:$0xff]   ;;  %v4755_v46 = vld [vmem:[#allocation2 + $0x754] ss:$24 sps:$4 sm:$0xff]  }
  0xf9   :  { %1870 = vmatpush1.bf16.msra.mxu0 %v4669_v47  ;;  %v4758_v47 = vld [vmem:[#allocation2 + $0x75c] ss:$24 sps:$4 sm:$0xff]  }
  0xfa   :  { %1999 = vmatpush1.bf16.msra.mxu1 %v4672_v48  ;;  %1871 = vmatprep.subr.bf16.mxu0 %v4677_v49  ;;  %v4753_v48 = vld [vmem:[#allocation2 + $0x750] ss:$24 sps:$4 sm:$0xff]  }
  0xfb   :  { %2000 = vmatprep.subr.bf16.mxu1 %v4680_v51  ;;  %v4756_v49 = vld [vmem:[#allocation2 + $0x758] ss:$24 sps:$4 sm:$0xff]   ;;  %v4761_v51 = vld [vmem:[#allocation2 + $0x784] ss:$24 sps:$4 sm:$0xff]  }
  0xfd   :  { %1872 = vmatpush1.bf16.msra.mxu0 %v4675_v52  ;;  %v4764_v52 = vld [vmem:[#allocation2 + $0x78c] ss:$24 sps:$4 sm:$0xff]  }
  0xfe   :  { %2001 = vmatpush1.bf16.msra.mxu1 %v4678_v53  ;;  %1873 = vmatprep.subr.bf16.mxu0 %v4683_v54  ;;  %v4759_v53 = vld [vmem:[#allocation2 + $0x780] ss:$24 sps:$4 sm:$0xff]  }
  0xff   :  { %2002 = vmatprep.subr.bf16.mxu1 %v4686_v55  ;;  %v4762_v54 = vld [vmem:[#allocation2 + $0x788] ss:$24 sps:$4 sm:$0xff]   ;;  %v4767_v55 = vld [vmem:[#allocation2 + $0x7b4] ss:$24 sps:$4 sm:$0xff]  }
 0x101   :  { %1874 = vmatpush1.bf16.msra.mxu0 %v4681_v56  ;;  %v4770_v56 = vld [vmem:[#allocation2 + $0x7bc] ss:$24 sps:$4 sm:$0xff]  }
 0x102   :  { %2003 = vmatpush1.bf16.msra.mxu1 %v4684_v57  ;;  %1875 = vmatprep.subr.bf16.mxu0 %v4689_v58  ;;  %v4765_v57 = vld [vmem:[#allocation2 + $0x7b0] ss:$24 sps:$4 sm:$0xff]  }
 0x103   :  { %2004 = vmatprep.subr.bf16.mxu1 %v4692_v59  ;;  %v4768_v58 = vld [vmem:[#allocation2 + $0x7b8] ss:$24 sps:$4 sm:$0xff]   ;;  %v4773_v59 = vld [vmem:[#allocation2 + $0x7e4] ss:$24 sps:$4 sm:$0xff]  }
 0x105   :  { %1876 = vmatpush1.bf16.msra.mxu0 %v4687_v60  ;;  %v4776_v60 = vld [vmem:[#allocation2 + $0x7ec] ss:$24 sps:$4 sm:$0xff]  }
 0x106   :  { %2005 = vmatpush1.bf16.msra.mxu1 %v4690_v61  ;;  %1877 = vmatprep.subr.bf16.mxu0 %v4695_v62  ;;  %v4771_v61 = vld [vmem:[#allocation2 + $0x7e0] ss:$24 sps:$4 sm:$0xff]  }
 0x107   :  { %2006 = vmatprep.subr.bf16.mxu1 %v4698_v63  ;;  %v4774_v62 = vld [vmem:[#allocation2 + $0x7e8] ss:$24 sps:$4 sm:$0xff]   ;;  %v4779_v63 = vld [vmem:[#allocation2 + $0x814] ss:$24 sps:$4 sm:$0xff]  }
 0x109   :  { %1878 = vmatpush1.bf16.msra.mxu0 %v4693_v0  ;;  %v4782_v0 = vld [vmem:[#allocation2 + $0x81c] ss:$24 sps:$4 sm:$0xff]  }
 0x10a   :  { %2007 = vmatpush1.bf16.msra.mxu1 %v4696_v1  ;;  %1879 = vmatprep.subr.bf16.mxu0 %v4701_v2  ;;  %v4777_v1 = vld [vmem:[#allocation2 + $0x810] ss:$24 sps:$4 sm:$0xff]  }
 0x10b   :  { %2008 = vmatprep.subr.bf16.mxu1 %v4704_v3  ;;  %v4780_v2 = vld [vmem:[#allocation2 + $0x818] ss:$24 sps:$4 sm:$0xff]   ;;  %v4785_v3 = vld [vmem:[#allocation2 + $0x844] ss:$24 sps:$4 sm:$0xff]  }
 0x10d   :  { %1880 = vmatpush1.bf16.msra.mxu0 %v4699_v4  ;;  %v4788_v4 = vld [vmem:[#allocation2 + $0x84c] ss:$24 sps:$4 sm:$0xff]  }
 0x10e   :  { %2009 = vmatpush1.bf16.msra.mxu1 %v4702_v5  ;;  %1881 = vmatprep.subr.bf16.mxu0 %v4707_v6  ;;  %v4783_v5 = vld [vmem:[#allocation2 + $0x840] ss:$24 sps:$4 sm:$0xff]  }
 0x10f   :  { %2010 = vmatprep.subr.bf16.mxu1 %v4710_v7  ;;  %v4786_v6 = vld [vmem:[#allocation2 + $0x848] ss:$24 sps:$4 sm:$0xff]  }
 0x110   :  { %v138_v7 = vld [vmem:[%s5640_s0 + $0x20] sm:$0xff] }
 0x111   :  { %1882 = vmatpush1.bf16.msra.mxu0 %v4705_v8  ;;  %v144_v8 = vld [vmem:[%s5640_s0 + $0x50] sm:$0xff] }
 0x112   :  { %2011 = vmatpush1.bf16.msra.mxu1 %v4708_v10  ;;  %1894 = vmatprep.subr.bf16.mxu0 %v4713_v11  ;;  %v4791_v10 = vld [vmem:[#allocation2 + $0x14] ss:$24 sps:$4 sm:$0xff]   ;;  %v5561_v11 = vpack.c.bf16 %v144_v8, %v138_v7 }
 0x113   :  { %2023 = vmatprep.subr.bf16.mxu1 %v4716_v14  ;;  %v4792_v14 = vld [vmem:[#allocation2 + $0x40] ss:$24 sps:$4 sm:$0xff]   ;;  %v4845_v7 = vld [vmem:[#allocation2 + $0x374] ss:$24 sps:$4 sm:$0xff]  }
 0x114   :  { %1884 = vmatmul.mubr.bf16.vlgmr.msra.gmra.mrb[0].mxu0 %v5539_v17  ;;  %v4958_v8 = vld [vmem:[#allocation6 + $0xf0] ss:$12 sps:$4 sm:$0xff]  }
 0x115   :  { %2013 = vmatmul.mubr.bf16.vlgmr.msra.gmra.mrb[0].mxu1 %v5539_v17  ;;  %1895 = vmatpush1.bf16.msra.mxu0 %v4711_v15  ;;  %v4797_v15 = vld [vmem:[#allocation2 + $0x74] ss:$24 sps:$4 sm:$0xff]  }
 0x116   :  { %2024 = vmatpush1.bf16.msra.mxu1 %v4714_v16  ;;  %1896 = vmatprep.subr.bf16.mxu0 %v4719_v20  ;;  %v4795_v16 = vld [vmem:[#allocation2 + $0x70] ss:$24 sps:$4 sm:$0xff]   ;;  %v4803_v20 = vld [vmem:[#allocation2 + $0xd4] ss:$24 sps:$4 sm:$0xff]  }
 0x117   :  { %2025 = vmatprep.subr.bf16.mxu1 %v4722_v21  ;;  %4128 = vmatprep.mubr.msk.bf16.mxu0 %vm1804_vm0, %v5547_v22  ;;  %v4801_v21 = vld [vmem:[#allocation2 + $0xd0] ss:$24 sps:$4 sm:$0xff]  }
 0x118   :  { %4129 = vmatprep.mubr.msk.bf16.mxu1 %vm1804_vm0, %v5547_v22 }
 0x119   :  { %1897 = vmatpush1.bf16.msra.mxu0 %v4717_v23  ;;  %v4806_v23 = vld [vmem:[#allocation2 + $0x104] ss:$24 sps:$4 sm:$0xff]  }
 0x11a   :  { %2026 = vmatpush1.bf16.msra.mxu1 %v4720_v24  ;;  %1898 = vmatprep.subr.bf16.mxu0 %v4725_v25  ;;  %v4804_v24 = vld [vmem:[#allocation2 + $0x100] ss:$24 sps:$4 sm:$0xff]   ;;  %v4809_v25 = vld [vmem:[#allocation2 + $0x134] ss:$24 sps:$4 sm:$0xff]  }
 0x11b   :  { %2027 = vmatprep.subr.bf16.mxu1 %v4728_v26  ;;  %v4807_v26 = vld [vmem:[#allocation2 + $0x130] ss:$24 sps:$4 sm:$0xff]  }
 0x11d   :  { %1899 = vmatpush1.bf16.msra.mxu0 %v4723_v27  ;;  %v4810_v27 = vld [vmem:[#allocation2 + $0x160] ss:$24 sps:$4 sm:$0xff]  }
 0x11e   :  { %2028 = vmatpush1.bf16.msra.mxu1 %v4726_v28  ;;  %1900 = vmatprep.subr.bf16.mxu0 %v4731_v29  ;;  %v4815_v28 = vld [vmem:[#allocation2 + $0x194] ss:$24 sps:$4 sm:$0xff]   ;;  %v4911_v29 = vld [vmem:[#allocation6 + $0x4] ss:$12 sps:$4 sm:$0xff]  }
 0x11f   :  { %2029 = vmatprep.subr.bf16.mxu1 %v4734_v30  ;;  %v4909_v30 = vld [vmem:[#allocation6] ss:$12 sps:$4 sm:$0xff]  }
 0x121   :  { %1901 = vmatpush1.bf16.msra.mxu0 %v4729_v31  ;;  %v4813_v31 = vld [vmem:[#allocation2 + $0x190] ss:$24 sps:$4 sm:$0xff]  }
 0x122   :  { %2030 = vmatpush1.bf16.msra.mxu1 %v4732_v32  ;;  %1902 = vmatprep.subr.bf16.mxu0 %v4737_v33  ;;  %v4818_v32 = vld [vmem:[#allocation2 + $0x1c4] ss:$24 sps:$4 sm:$0xff]  }
 0x123   :  { %2031 = vmatprep.subr.bf16.mxu1 %v4740_v34  ;;  %v4917_v33 = vld [vmem:[#allocation6 + $0x1c] ss:$12 sps:$4 sm:$0xff]   ;;  %v4915_v34 = vld [vmem:[#allocation6 + $0x18] ss:$12 sps:$4 sm:$0xff]  }
 0x125   :  { %1903 = vmatpush1.bf16.msra.mxu0 %v4735_v35  ;;  %v4816_v35 = vld [vmem:[#allocation2 + $0x1c0] ss:$24 sps:$4 sm:$0xff]  }
 0x126   :  { %2032 = vmatpush1.bf16.msra.mxu1 %v4738_v37  ;;  %1904 = vmatprep.subr.bf16.mxu0 %v4743_v38  ;;  %v4821_v37 = vld [vmem:[#allocation2 + $0x1f4] ss:$24 sps:$4 sm:$0xff]  }
 0x127   :  { %2033 = vmatprep.subr.bf16.mxu1 %v4746_v39  ;;  %v4923_v38 = vld [vmem:[#allocation6 + $0x34] ss:$12 sps:$4 sm:$0xff]   ;;  %v4921_v39 = vld [vmem:[#allocation6 + $0x30] ss:$12 sps:$4 sm:$0xff]  }
 0x129   :  { %1905 = vmatpush1.bf16.msra.mxu0 %v4741_v40  ;;  %v4819_v40 = vld [vmem:[#allocation2 + $0x1f0] ss:$24 sps:$4 sm:$0xff]  }
 0x12a   :  { %2034 = vmatpush1.bf16.msra.mxu1 %v4744_v41  ;;  %1906 = vmatprep.subr.bf16.mxu0 %v4749_v42  ;;  %v4824_v41 = vld [vmem:[#allocation2 + $0x224] ss:$24 sps:$4 sm:$0xff]  }
 0x12b   :  { %2035 = vmatprep.subr.bf16.mxu1 %v4752_v43  ;;  %v4929_v42 = vld [vmem:[#allocation6 + $0x4c] ss:$12 sps:$4 sm:$0xff]   ;;  %v4927_v43 = vld [vmem:[#allocation6 + $0x48] ss:$12 sps:$4 sm:$0xff]  }
 0x12d   :  { %1907 = vmatpush1.bf16.msra.mxu0 %v4747_v44  ;;  %v4822_v44 = vld [vmem:[#allocation2 + $0x220] ss:$24 sps:$4 sm:$0xff]  }
 0x12e   :  { %2036 = vmatpush1.bf16.msra.mxu1 %v4750_v45  ;;  %1908 = vmatprep.subr.bf16.mxu0 %v4755_v46  ;;  %v4827_v45 = vld [vmem:[#allocation2 + $0x254] ss:$24 sps:$4 sm:$0xff]   ;;  %v4935_v46 = vld [vmem:[#allocation6 + $0x64] ss:$12 sps:$4 sm:$0xff]  }
 0x12f   :  { %2037 = vmatprep.subr.bf16.mxu1 %v4758_v47  ;;  %v4933_v47 = vld [vmem:[#allocation6 + $0x60] ss:$12 sps:$4 sm:$0xff]  }
 0x131   :  { %1909 = vmatpush1.bf16.msra.mxu0 %v4753_v48  ;;  %v4825_v48 = vld [vmem:[#allocation2 + $0x250] ss:$24 sps:$4 sm:$0xff]  }
 0x132   :  { %2038 = vmatpush1.bf16.msra.mxu1 %v4756_v49  ;;  %1910 = vmatprep.subr.bf16.mxu0 %v4761_v51  ;;  %v4830_v49 = vld [vmem:[#allocation2 + $0x284] ss:$24 sps:$4 sm:$0xff]   ;;  %v4828_v51 = vld [vmem:[#allocation2 + $0x280] ss:$24 sps:$4 sm:$0xff]  }
 0x133   :  { %2039 = vmatprep.subr.bf16.mxu1 %v4764_v52  ;;  %v4941_v52 = vld [vmem:[#allocation6 + $0x7c] ss:$12 sps:$4 sm:$0xff]  }
 0x135   :  { %1911 = vmatpush1.bf16.msra.mxu0 %v4759_v53  ;;  %v4833_v53 = vld [vmem:[#allocation2 + $0x2b4] ss:$24 sps:$4 sm:$0xff]  }
 0x136   :  { %2040 = vmatpush1.bf16.msra.mxu1 %v4762_v54  ;;  %1912 = vmatprep.subr.bf16.mxu0 %v4767_v55  ;;  %v4939_v54 = vld [vmem:[#allocation6 + $0x78] ss:$12 sps:$4 sm:$0xff]   ;;  %v4944_v55 = vld [vmem:[#allocation6 + $0x94] ss:$12 sps:$4 sm:$0xff]  }
 0x137   :  { %2041 = vmatprep.subr.bf16.mxu1 %v4770_v56  ;;  %v4942_v56 = vld [vmem:[#allocation6 + $0x90] ss:$12 sps:$4 sm:$0xff]  }
 0x139   :  { %1913 = vmatpush1.bf16.msra.mxu0 %v4765_v57  ;;  %v4947_v57 = vld [vmem:[#allocation6 + $0xac] ss:$12 sps:$4 sm:$0xff]  }
 0x13a   :  { %2042 = vmatpush1.bf16.msra.mxu1 %v4768_v58  ;;  %1914 = vmatprep.subr.bf16.mxu0 %v4773_v59  ;;  %v4831_v58 = vld [vmem:[#allocation2 + $0x2b0] ss:$24 sps:$4 sm:$0xff]   ;;  %v4836_v59 = vld [vmem:[#allocation2 + $0x2e4] ss:$24 sps:$4 sm:$0xff]  }
 0x13b   :  { %2043 = vmatprep.subr.bf16.mxu1 %v4776_v60  ;;  %v4945_v60 = vld [vmem:[#allocation6 + $0xa8] ss:$12 sps:$4 sm:$0xff]  }
 0x13d   :  { %1915 = vmatpush1.bf16.msra.mxu0 %v4771_v61  ;;  %v4950_v61 = vld [vmem:[#allocation6 + $0xc4] ss:$12 sps:$4 sm:$0xff]  }
 0x13e   :  { %2044 = vmatpush1.bf16.msra.mxu1 %v4774_v62  ;;  %1916 = vmatprep.subr.bf16.mxu0 %v4779_v63  ;;  %v4834_v62 = vld [vmem:[#allocation2 + $0x2e0] ss:$24 sps:$4 sm:$0xff]   ;;  %v4839_v63 = vld [vmem:[#allocation2 + $0x314] ss:$24 sps:$4 sm:$0xff]  }
 0x13f   :  { %2045 = vmatprep.subr.bf16.mxu1 %v4782_v0  ;;  %v4948_v0 = vld [vmem:[#allocation6 + $0xc0] ss:$12 sps:$4 sm:$0xff]  }
 0x141   :  { %1917 = vmatpush1.bf16.msra.mxu0 %v4777_v1  ;;  %v4955_v1 = vld [vmem:[#allocation6 + $0xdc] ss:$12 sps:$4 sm:$0xff]  }
 0x142   :  { %2046 = vmatpush1.bf16.msra.mxu1 %v4780_v2  ;;  %1918 = vmatprep.subr.bf16.mxu0 %v4785_v3  ;;  %v4837_v2 = vld [vmem:[#allocation2 + $0x310] ss:$24 sps:$4 sm:$0xff]   ;;  %v4842_v3 = vld [vmem:[#allocation2 + $0x344] ss:$24 sps:$4 sm:$0xff]  }
 0x143   :  { %2047 = vmatprep.subr.bf16.mxu1 %v4788_v4  ;;  %v4953_v4 = vld [vmem:[#allocation6 + $0xd8] ss:$12 sps:$4 sm:$0xff]  }
 0x145   :  { %1919 = vmatpush1.bf16.msra.mxu0 %v4783_v5  ;;  %v4960_v5 = vld [vmem:[#allocation6 + $0xf4] ss:$12 sps:$4 sm:$0xff]  }
 0x146   :  { %2048 = vmatpush1.bf16.msra.mxu1 %v4786_v6  ;;  %2066 = vmatprep.subr.bf16.mxu0 %v4791_v10  ;;  %v4840_v6 = vld [vmem:[#allocation2 + $0x340] ss:$24 sps:$4 sm:$0xff]  }
 0x147   :  { %3190 = vmatprep.subr.bf16.mxu1 %v4911_v29  ;;  %v4965_v10 = vld [vmem:[#allocation6 + $0x10c] ss:$12 sps:$4 sm:$0xff]  }
 0x148   :  { %1927 = vmatmul.mubr.bf16.vlgmr.msra.gmra.mrb[0].mxu0 %v5561_v11  ;;  %v4858_v29 = vld [vmem:[#allocation2 + $0x460] ss:$24 sps:$4 sm:$0xff]  }
 0x149   :  { %2056 = vmatmul.mubr.bf16.vlgmr.msra.gmra.mrb[0].mxu1 %v5561_v11  ;;  %2067 = vmatpush1.bf16.msra.mxu0 %v4789_v12  ;;  %v4843_v12 = vld [vmem:[#allocation2 + $0x370] ss:$24 sps:$4 sm:$0xff]  }
 0x14a   :  { %2098 = vmatprep.mubr.bf16.mxu0 %v5509_v50  ;;  %2068 = vmatprep.subr.bf16.mxu0 %v4794_v13  ;;  %v4812_v50 = vld [vmem:[#allocation2 + $0x164] ss:$24 sps:$4 sm:$0xff]  }
 0x14b   :  { %3191 = vmatpush1.bf16.msra.mxu1 %v4909_v30  ;;  %v4848_v13 = vld [vmem:[#allocation2 + $0x3a4] ss:$24 sps:$4 sm:$0xff]  }
 0x14c   :  { %3192 = vmatprep.subr.bf16.mxu1 %v4917_v33  ;;  %v4983_v30 = vld [vmem:[#allocation6 + $0x168] ss:$12 sps:$4 sm:$0xff]   ;;  %v4990_v33 = vld [vmem:[#allocation6 + $0x184] ss:$12 sps:$4 sm:$0xff]  }
 0x14d   :  { %2069 = vmatpush1.bf16.msra.mxu0 %v4792_v14  ;;  %v4963_v14 = vld [vmem:[#allocation6 + $0x108] ss:$12 sps:$4 sm:$0xff]  }
 0x14e   :  { %2070 = vmatprep.subr.bf16.mxu0 %v4797_v15  ;;  %v4970_v15 = vld [vmem:[#allocation6 + $0x124] ss:$12 sps:$4 sm:$0xff]  }
 0x14f   :  { %3193 = vmatpush1.bf16.msra.mxu1 %v4915_v34  ;;  %v4866_v34 = vld [vmem:[#allocation2 + $0x4c4] ss:$24 sps:$4 sm:$0xff]  }
 0x150   :  { %3194 = vmatprep.subr.bf16.mxu1 %v4923_v38  ;;  %v4867_v38 = vld [vmem:[#allocation2 + $0x4f0] ss:$24 sps:$4 sm:$0xff]  }
 0x151   :  { %2071 = vmatpush1.bf16.msra.mxu0 %v4795_v16  ;;  %v4846_v16 = vld [vmem:[#allocation2 + $0x3a0] ss:$24 sps:$4 sm:$0xff]  }
 0x152   :  { %2072 = vmatprep.subr.bf16.mxu0 %v4800_v18  ;;  %v4968_v18 = vld [vmem:[#allocation6 + $0x120] ss:$12 sps:$4 sm:$0xff]  }
 0x153   :  { %3195 = vmatpush1.bf16.msra.mxu1 %v4921_v39  ;;  %v4872_v39 = vld [vmem:[#allocation2 + $0x524] ss:$24 sps:$4 sm:$0xff]  }
 0x154   :  { %3196 = vmatprep.subr.bf16.mxu1 %v4929_v42  ;;  %v4873_v42 = vld [vmem:[#allocation2 + $0x550] ss:$24 sps:$4 sm:$0xff]  }
 0x155   :  { %2073 = vmatpush1.bf16.msra.mxu0 %v4798_v19  ;;  %v4849_v19 = vld [vmem:[#allocation2 + $0x3d0] ss:$24 sps:$4 sm:$0xff]  }
 0x156   :  { %2074 = vmatprep.subr.bf16.mxu0 %v4803_v20  ;;  %v4854_v20 = vld [vmem:[#allocation2 + $0x404] ss:$24 sps:$4 sm:$0xff]  }
 0x157   :  { %3197 = vmatpush1.bf16.msra.mxu1 %v4927_v43  ;;  %v4878_v43 = vld [vmem:[#allocation2 + $0x584] ss:$24 sps:$4 sm:$0xff]  }
 0x158   :  { %3198 = vmatprep.subr.bf16.mxu1 %v4935_v46  ;;  %v4879_v46 = vld [vmem:[#allocation2 + $0x5b0] ss:$24 sps:$4 sm:$0xff]  }
 0x159   :  { %2075 = vmatpush1.bf16.msra.mxu0 %v4801_v21  ;;  %v4973_v21 = vld [vmem:[#allocation6 + $0x138] ss:$12 sps:$4 sm:$0xff]  }
 0x15a   :  { %2076 = vmatprep.subr.bf16.mxu0 %v4806_v23  ;;  %v4852_v23 = vld [vmem:[#allocation2 + $0x400] ss:$24 sps:$4 sm:$0xff]  }
 0x15b   :  { %3199 = vmatpush1.bf16.msra.mxu1 %v4933_v47  ;;  %v4884_v47 = vld [vmem:[#allocation2 + $0x5e4] ss:$24 sps:$4 sm:$0xff]  }
 0x15c   :  { %3200 = vmatprep.subr.bf16.mxu1 %v4941_v52  ;;  %v4890_v52 = vld [vmem:[#allocation2 + $0x644] ss:$24 sps:$4 sm:$0xff]  }
 0x15d   :  { %2077 = vmatpush1.bf16.msra.mxu0 %v4804_v24  ;;  %v4857_v24 = vld [vmem:[#allocation2 + $0x434] ss:$24 sps:$4 sm:$0xff]  }
 0x15e   :  { %2078 = vmatprep.subr.bf16.mxu0 %v4809_v25  ;;  %v4980_v25 = vld [vmem:[#allocation6 + $0x154] ss:$12 sps:$4 sm:$0xff]  }
 0x15f   :  { %3201 = vmatpush1.bf16.msra.mxu1 %v4939_v54  ;;  %v4893_v54 = vld [vmem:[#allocation2 + $0x674] ss:$24 sps:$4 sm:$0xff]  }
 0x160   :  { %3202 = vmatprep.subr.bf16.mxu1 %v4944_v55  ;;  %v4891_v55 = vld [vmem:[#allocation2 + $0x670] ss:$24 sps:$4 sm:$0xff]  }
 0x161   :  { %2079 = vmatpush1.bf16.msra.mxu0 %v4807_v26  ;;  %v4855_v26 = vld [vmem:[#allocation2 + $0x430] ss:$24 sps:$4 sm:$0xff]  }
 0x162   :  { %2080 = vmatprep.subr.bf16.mxu0 %v4812_v50  ;;  %v4978_v50 = vld [vmem:[#allocation6 + $0x150] ss:$12 sps:$4 sm:$0xff]  }
 0x163   :  { %3203 = vmatpush1.bf16.msra.mxu1 %v4942_v56  ;;  %v4896_v56 = vld [vmem:[#allocation2 + $0x6a4] ss:$24 sps:$4 sm:$0xff]  }
 0x164   :  { %3204 = vmatprep.subr.bf16.mxu1 %v4947_v57  ;;  %v4894_v57 = vld [vmem:[#allocation2 + $0x6a0] ss:$24 sps:$4 sm:$0xff]  }
 0x165   :  { %2081 = vmatpush1.bf16.msra.mxu0 %v4810_v27  ;;  %v4860_v27 = vld [vmem:[#allocation2 + $0x464] ss:$24 sps:$4 sm:$0xff]  }
 0x166   :  { %2082 = vmatprep.subr.bf16.mxu0 %v4815_v28  ;;  %v4985_v28 = vld [vmem:[#allocation6 + $0x16c] ss:$12 sps:$4 sm:$0xff]  }
 0x167   :  { %3205 = vmatpush1.bf16.msra.mxu1 %v4945_v60  ;;  %v4902_v60 = vld [vmem:[#allocation2 + $0x704] ss:$24 sps:$4 sm:$0xff]  }
 0x168   :  { %3206 = vmatprep.subr.bf16.mxu1 %v4950_v61  ;;  %v4905_v61 = vld [vmem:[#allocation2 + $0x734] ss:$24 sps:$4 sm:$0xff]  }
 0x169   :  { %2083 = vmatpush1.bf16.msra.mxu0 %v4813_v31  ;;  %v4863_v31 = vld [vmem:[#allocation2 + $0x494] ss:$24 sps:$4 sm:$0xff]  }
 0x16a   :  { %2084 = vmatprep.subr.bf16.mxu0 %v4818_v32  ;;  %v4861_v32 = vld [vmem:[#allocation2 + $0x490] ss:$24 sps:$4 sm:$0xff]  }
 0x16b   :  { %3207 = vmatpush1.bf16.msra.mxu1 %v4948_v0  ;;  %v4914_v0 = vld [vmem:[#allocation2 + $0x794] ss:$24 sps:$4 sm:$0xff]  }
 0x16c   :  { %3208 = vmatprep.subr.bf16.mxu1 %v4955_v1  ;;  %v4912_v1 = vld [vmem:[#allocation2 + $0x790] ss:$24 sps:$4 sm:$0xff]  }
 0x16d   :  { %2085 = vmatpush1.bf16.msra.mxu0 %v4816_v35  ;;  %v4864_v35 = vld [vmem:[#allocation2 + $0x4c0] ss:$24 sps:$4 sm:$0xff]  }
 0x16e   :  { %2086 = vmatprep.subr.bf16.mxu0 %v4821_v37  ;;  %v4869_v37 = vld [vmem:[#allocation2 + $0x4f4] ss:$24 sps:$4 sm:$0xff]  }
 0x16f   :  { %3209 = vmatpush1.bf16.msra.mxu1 %v4953_v4  ;;  %v4926_v4 = vld [vmem:[#allocation2 + $0x7f4] ss:$24 sps:$4 sm:$0xff]  }
 0x170   :  { %3210 = vmatprep.subr.bf16.mxu1 %v4960_v5  ;;  %v4924_v5 = vld [vmem:[#allocation2 + $0x7f0] ss:$24 sps:$4 sm:$0xff]  }
 0x171   :  { %2087 = vmatpush1.bf16.msra.mxu0 %v4819_v40  ;;  %v4870_v40 = vld [vmem:[#allocation2 + $0x520] ss:$24 sps:$4 sm:$0xff]  }
 0x172   :  { %2088 = vmatprep.subr.bf16.mxu0 %v4824_v41  ;;  %v4875_v41 = vld [vmem:[#allocation2 + $0x554] ss:$24 sps:$4 sm:$0xff]  }
 0x173   :  { %3211 = vmatpush1.bf16.msra.mxu1 %v4958_v8  ;;  %v4938_v8 = vld [vmem:[#allocation2 + $0x854] ss:$24 sps:$4 sm:$0xff]  }
 0x174   :  { %3212 = vmatprep.subr.bf16.mxu1 %v4965_v10  ;;  %v4936_v10 = vld [vmem:[#allocation2 + $0x850] ss:$24 sps:$4 sm:$0xff]  }
 0x175   :  { %2089 = vmatpush1.bf16.msra.mxu0 %v4822_v44  ;;  %v4876_v44 = vld [vmem:[#allocation2 + $0x580] ss:$24 sps:$4 sm:$0xff]  }
 0x176   :  { %2090 = vmatprep.subr.bf16.mxu0 %v4827_v45  ;;  %v4881_v45 = vld [vmem:[#allocation2 + $0x5b4] ss:$24 sps:$4 sm:$0xff]  }
 0x177   :  { %3213 = vmatpush1.bf16.msra.mxu1 %v4963_v14  ;;  %v4956_v14 = vld [vmem:[#allocation6 + $0xe0] ss:$12 sps:$4 sm:$0xff]  }
 0x178   :  { %3214 = vmatprep.subr.bf16.mxu1 %v4970_v15  ;;  %v4957_v15 = vld [vmem:[#allocation6 + $0x20] ss:$12 sps:$4 sm:$0xff]  }
 0x179   :  { %2091 = vmatpush1.bf16.msra.mxu0 %v4825_v48  ;;  %v4882_v48 = vld [vmem:[#allocation2 + $0x5e0] ss:$24 sps:$4 sm:$0xff]  }
 0x17a   :  { %2092 = vmatprep.subr.bf16.mxu0 %v4830_v49  ;;  %v4887_v49 = vld [vmem:[#allocation2 + $0x614] ss:$24 sps:$4 sm:$0xff]  }
 0x17b   :  { %3215 = vmatpush1.bf16.msra.mxu1 %v4968_v18  ;;  %v4966_v18 = vld [vmem:[#allocation6 + $0x110] ss:$12 sps:$4 sm:$0xff]  }
 0x17d   :  { %2093 = vmatpush1.bf16.msra.mxu0 %v4828_v51  ;;  %v4885_v51 = vld [vmem:[#allocation2 + $0x610] ss:$24 sps:$4 sm:$0xff]  }
 0x17e   :  { %2094 = vmatprep.subr.bf16.mxu0 %v4833_v53  ;;  %v4888_v53 = vld [vmem:[#allocation2 + $0x640] ss:$24 sps:$4 sm:$0xff]  }
 0x181   :  { %2095 = vmatpush1.bf16.msra.mxu0 %v4831_v58  ;;  %v4899_v58 = vld [vmem:[#allocation2 + $0x6d4] ss:$24 sps:$4 sm:$0xff]  }
 0x182   :  { %2096 = vmatprep.subr.bf16.mxu0 %v4836_v59  ;;  %v4897_v59 = vld [vmem:[#allocation2 + $0x6d0] ss:$24 sps:$4 sm:$0xff]  }
 0x185   :  { %2097 = vmatpush1.bf16.msra.mxu0 %v4834_v62  ;;  %v4908_v62 = vld [vmem:[#allocation2 + $0x764] ss:$24 sps:$4 sm:$0xff]  }
 0x186   :  { %2109 = vmatprep.subr.bf16.mxu0 %v4839_v63  ;;  %v4906_v63 = vld [vmem:[#allocation2 + $0x760] ss:$24 sps:$4 sm:$0xff]  }
 0x188   :  { %2099 = vmatmul.mubr.bf16.vlgmr.msra.gmra.mrb[4].mxu0 %v5519_v9  ;;  %v4851_v9 = vld [vmem:[#allocation2 + $0x3d4] ss:$24 sps:$4 sm:$0xff]  }
 0x189   :  { %2110 = vmatpush1.bf16.msra.mxu0 %v4837_v2  ;;  %2141 = vmatprep.mubr.bf16.mxu0 %v5529_v36  ;;  %v4975_v36 = vld [vmem:[#allocation6 + $0x13c] ss:$12 sps:$4 sm:$0xff]  }
 0x18a   :  { %2111 = vmatprep.subr.bf16.mxu0 %v4842_v3  ;;  %3216 = vmatprep.subr.bf16.mxu1 %v4975_v36  ;;  %v4920_v2 = vld [vmem:[#allocation2 + $0x7c4] ss:$24 sps:$4 sm:$0xff]   ;;  %v4918_v3 = vld [vmem:[#allocation2 + $0x7c0] ss:$24 sps:$4 sm:$0xff]  }
 0x18b   :  { %3217 = vmatpush1.bf16.msra.mxu1 %v4973_v21  ;;  %v4967_v36 = vld [vmem:[#allocation6 + $0x50] ss:$12 sps:$4 sm:$0xff]   ;;  %v4976_v21 = vld [vmem:[#allocation6 + $0x140] ss:$12 sps:$4 sm:$0xff]  }
 0x18c   :  { %3218 = vmatprep.subr.bf16.mxu1 %v4980_v25 }
 0x18d   :  { %2112 = vmatpush1.bf16.msra.mxu0 %v4840_v6  ;;  %v4932_v6 = vld [vmem:[#allocation2 + $0x824] ss:$24 sps:$4 sm:$0xff]  }
 0x18e   :  { %2113 = vmatprep.subr.bf16.mxu0 %v4845_v7  ;;  %v4930_v7 = vld [vmem:[#allocation2 + $0x820] ss:$24 sps:$4 sm:$0xff]  }
 0x18f   :  { %3219 = vmatpush1.bf16.msra.mxu1 %v4978_v50  ;;  %v4986_v50 = vld [vmem:[#allocation6 + $0x170] ss:$12 sps:$4 sm:$0xff]  }
 0x190   :  { %3220 = vmatprep.subr.bf16.mxu1 %v4985_v28 }
 0x191   :  { %2114 = vmatpush1.bf16.msra.mxu0 %v4843_v12  ;;  %v4951_v12 = vld [vmem:[#allocation6 + $0xc8] ss:$12 sps:$4 sm:$0xff]  }
 0x192   :  { %2115 = vmatprep.subr.bf16.mxu0 %v4848_v13  ;;  %v4952_v13 = vld [vmem:[#allocation6 + $0x8] ss:$12 sps:$4 sm:$0xff]  }
 0x193   :  { %3221 = vmatpush1.bf16.msra.mxu1 %v4983_v30 }
 0x194   :  { %3233 = vmatprep.subr.bf16.mxu1 %v4990_v33  ;;  %v5063_v33 = vld [vmem:[#allocation6 + $0x3c8] ss:$12 sps:$4 sm:$0xff]  }
 0x195   :  { %2116 = vmatpush1.bf16.msra.mxu0 %v4846_v16  ;;  %v4961_v16 = vld [vmem:[#allocation6 + $0xf8] ss:$12 sps:$4 sm:$0xff]  }
 0x196   :  { %2117 = vmatprep.subr.bf16.mxu0 %v4851_v9  ;;  %v4962_v9 = vld [vmem:[#allocation6 + $0x38] ss:$12 sps:$4 sm:$0xff]  }
 0x199   :  { %2118 = vmatpush1.bf16.msra.mxu0 %v4849_v19  ;;  %v4971_v19 = vld [vmem:[#allocation6 + $0x128] ss:$12 sps:$4 sm:$0xff]  }
 0x19a   :  { %2119 = vmatprep.subr.bf16.mxu0 %v4854_v20  ;;  %v4972_v20 = vld [vmem:[#allocation6 + $0x68] ss:$12 sps:$4 sm:$0xff]  }
 0x19d   :  { %2120 = vmatpush1.bf16.msra.mxu0 %v4852_v23  ;;  %v424_v23 = vlaneseq }
 0x19e   :  { %2121 = vmatprep.subr.bf16.mxu0 %v4857_v24  ;;  %v4977_v24 = vld [vmem:[#allocation6 + $0x80] ss:$12 sps:$4 sm:$0xff]  }
 0x19f   :  { %v5572_v25 = vshrl.u32 %v424_v23, 7  ;;  %v5088_v23 = vld [vmem:[#allocation6 + $0x440] ss:$12 sps:$4 sm:$0xff]  }
 0x1a1   :  { %2122 = vmatpush1.bf16.msra.mxu0 %v4855_v26  ;;  %v4982_v26 = vld [vmem:[#allocation6 + $0x98] ss:$12 sps:$4 sm:$0xff]   ;;  %v434_v28 = vsub.s32 2, %v5572_v25  ;;  %v430_v30 = vsub.s32 1, %v5572_v25 }
 0x1a2   :  { %2123 = vmatprep.subr.bf16.mxu0 %v4860_v27  ;;  %v426_v27 = vsub.s32 0, %v5572_v25 }
 0x1a5   :  { %2124 = vmatpush1.bf16.msra.mxu0 %v4858_v29  ;;  %v5576_v29 = vld [vmem:[#allocation4] sm:$0x3f] }
 0x1a6   :  { %2125 = vmatprep.subr.bf16.mxu0 %v4863_v31  ;;  %v438_v31 = vsub.s32 3, %v5572_v25 }
 0x1a9   :  { %2126 = vmatpush1.bf16.msra.mxu0 %v4861_v32  ;;  %v4987_v32 = vld [vmem:[#allocation6 + $0xb0] ss:$12 sps:$4 sm:$0xff]  }
 0x1aa   :  { %2127 = vmatprep.subr.bf16.mxu0 %v4866_v34  ;;  %v427_v34 = vrot.slane %v5576_v29, %v426_v27 }
 0x1ad   :  { %2128 = vmatpush1.bf16.msra.mxu0 %v4864_v35  ;;  %v435_v35 = vrot.slane %v5576_v29, %v434_v28 }
 0x1ae   :  { %2129 = vmatprep.subr.bf16.mxu0 %v4869_v37  ;;  %v431_v37 = vrot.slane %v5576_v29, %v430_v30 }
 0x1b1   :  { %2130 = vmatpush1.bf16.msra.mxu0 %v4867_v38  ;;  %v439_v38 = vrot.slane %v5576_v29, %v438_v31  ;;  %v5009_v31 = vld [vmem:[#allocation6 + $0x228] ss:$12 sps:$4 sm:$0xff]  }
 0x1b2   :  { %2131 = vmatprep.subr.bf16.mxu0 %v4872_v39 }
 0x1b5   :  { %2132 = vmatpush1.bf16.msra.mxu0 %v4870_v40 }
 0x1b6   :  { %2133 = vmatprep.subr.bf16.mxu0 %v4875_v41 }
 0x1b9   :  { %2134 = vmatpush1.bf16.msra.mxu0 %v4873_v42 }
 0x1ba   :  { %2135 = vmatprep.subr.bf16.mxu0 %v4878_v43 }
 0x1bd   :  { %2136 = vmatpush1.bf16.msra.mxu0 %v4876_v44 }
 0x1be   :  { %2137 = vmatprep.subr.bf16.mxu0 %v4881_v45 }
 0x1c1   :  { %2138 = vmatpush1.bf16.msra.mxu0 %v4879_v46 }
 0x1c2   :  { %2139 = vmatprep.subr.bf16.mxu0 %v4884_v47 }
 0x1c5   :  { %2140 = vmatpush1.bf16.msra.mxu0 %v4882_v48 }
 0x1c6   :  { %2152 = vmatprep.subr.bf16.mxu0 %v4887_v49 }
 0x1c8   :  { %2142 = vmatmul.mubr.bf16.vlgmr.msra.gmra.mrb[4].mxu0 %v5539_v17  ;;  %v4900_v17 = vld [vmem:[#allocation2 + $0x700] ss:$24 sps:$4 sm:$0xff]  }
 0x1c9   :  { %2153 = vmatpush1.bf16.msra.mxu0 %v4885_v51  ;;  %4130 = vmatprep.mubr.msk.bf16.mxu0 %vm1804_vm0, %v5547_v22  ;;  %v4903_v22 = vld [vmem:[#allocation2 + $0x730] ss:$24 sps:$4 sm:$0xff]  }
 0x1ca   :  { %2154 = vmatprep.subr.bf16.mxu0 %v4890_v52 }
 0x1cd   :  { %2155 = vmatpush1.bf16.msra.mxu0 %v4888_v53 }
 0x1ce   :  { %2156 = vmatprep.subr.bf16.mxu0 %v4893_v54 }
 0x1d1   :  { %2157 = vmatpush1.bf16.msra.mxu0 %v4891_v55 }
 0x1d2   :  { %2158 = vmatprep.subr.bf16.mxu0 %v4896_v56 }
 0x1d5   :  { %2159 = vmatpush1.bf16.msra.mxu0 %v4894_v57 }
 0x1d6   :  { %2160 = vmatprep.subr.bf16.mxu0 %v4899_v58 }
 0x1d9   :  { %2161 = vmatpush1.bf16.msra.mxu0 %v4897_v59 }
 0x1da   :  { %2162 = vmatprep.subr.bf16.mxu0 %v4902_v60 }
 0x1dd   :  { %2163 = vmatpush1.bf16.msra.mxu0 %v4900_v17 }
 0x1de   :  { %2164 = vmatprep.subr.bf16.mxu0 %v4905_v61 }
 0x1e1   :  { %2165 = vmatpush1.bf16.msra.mxu0 %v4903_v22 }
 0x1e2   :  { %2166 = vmatprep.subr.bf16.mxu0 %v4908_v62 }
 0x1e5   :  { %2167 = vmatpush1.bf16.msra.mxu0 %v4906_v63 }
 0x1e6   :  { %2168 = vmatprep.subr.bf16.mxu0 %v4914_v0 }
 0x1e9   :  { %2169 = vmatpush1.bf16.msra.mxu0 %v4912_v1 }
 0x1ea   :  { %2170 = vmatprep.subr.bf16.mxu0 %v4920_v2  ;;  %v4988_v2 = vld [vmem:[#allocation6 + $0x180] ss:$12 sps:$4 sm:$0xff]  }
 0x1ed   :  { %2171 = vmatpush1.bf16.msra.mxu0 %v4918_v3  ;;  %v4993_v3 = vld [vmem:[#allocation6 + $0x19c] ss:$12 sps:$4 sm:$0xff]  }
 0x1ee   :  { %2172 = vmatprep.subr.bf16.mxu0 %v4926_v4  ;;  %v5064_v4 = vld [vmem:[#allocation6 + $0x308] ss:$12 sps:$4 sm:$0xff]  }
 0x1f1   :  { %2173 = vmatpush1.bf16.msra.mxu0 %v4924_v5  ;;  %v5068_v5 = vld [vmem:[#allocation6 + $0x3e0] ss:$12 sps:$4 sm:$0xff]  }
 0x1f2   :  { %2174 = vmatprep.subr.bf16.mxu0 %v4932_v6  ;;  %v4991_v6 = vld [vmem:[#allocation6 + $0x198] ss:$12 sps:$4 sm:$0xff]  }
 0x1f5   :  { %2175 = vmatpush1.bf16.msra.mxu0 %v4930_v7  ;;  %v4996_v7 = vld [vmem:[#allocation6 + $0x1b4] ss:$12 sps:$4 sm:$0xff]  }
 0x1f6   :  { %2176 = vmatprep.subr.bf16.mxu0 %v4938_v8  ;;  %v5069_v8 = vld [vmem:[#allocation6 + $0x320] ss:$12 sps:$4 sm:$0xff]  }
 0x1f9   :  { %2177 = vmatpush1.bf16.msra.mxu0 %v4936_v10  ;;  %v5073_v10 = vld [vmem:[#allocation6 + $0x3f8] ss:$12 sps:$4 sm:$0xff]  }
 0x1fa   :  { %4309 = vmatprep.subr.bf16.mxu0 %v4951_v12  ;;  %v4994_v12 = vld [vmem:[#allocation6 + $0x1b0] ss:$12 sps:$4 sm:$0xff]  }
 0x1fc   :  { %2185 = vmatmul.mubr.bf16.vlgmr.msra.gmra.mrb[4].mxu0 %v5561_v11  ;;  %v4981_v11 = vld [vmem:[#allocation6 + $0x158] ss:$12 sps:$4 sm:$0xff]  }
 0x1fd   :  { %4310 = vmatpush3.bf16.msra.mxu0 %v4952_v13  ;;  %v4999_v13 = vld [vmem:[#allocation6 + $0x1cc] ss:$12 sps:$4 sm:$0xff]  }
 0x1fe   :  { %4311 = vmatprep.subr.bf16.mxu0 %v4956_v14  ;;  %v5074_v14 = vld [vmem:[#allocation6 + $0x338] ss:$12 sps:$4 sm:$0xff]  }
 0x201   :  { %4312 = vmatpush3.bf16.msra.mxu0 %v4957_v15  ;;  %v5078_v15 = vld [vmem:[#allocation6 + $0x410] ss:$12 sps:$4 sm:$0xff]  }
 0x202   :  { %4313 = vmatprep.subr.bf16.mxu0 %v4961_v16  ;;  %v4997_v16 = vld [vmem:[#allocation6 + $0x1c8] ss:$12 sps:$4 sm:$0xff]  }
 0x205   :  { %4314 = vmatpush3.bf16.msra.mxu0 %v4962_v9  ;;  %v5002_v9 = vld [vmem:[#allocation6 + $0x1e4] ss:$12 sps:$4 sm:$0xff]  }
 0x206   :  { %4315 = vmatprep.subr.bf16.mxu0 %v4966_v18  ;;  %v5079_v18 = vld [vmem:[#allocation6 + $0x350] ss:$12 sps:$4 sm:$0xff]  }
 0x209   :  { %4316 = vmatpush3.bf16.msra.mxu0 %v4967_v36  ;;  %v5083_v36 = vld [vmem:[#allocation6 + $0x428] ss:$12 sps:$4 sm:$0xff]  }
 0x20a   :  { %4317 = vmatprep.subr.bf16.mxu0 %v4971_v19  ;;  %v5000_v19 = vld [vmem:[#allocation6 + $0x1e0] ss:$12 sps:$4 sm:$0xff]  }
 0x20d   :  { %4318 = vmatpush3.bf16.msra.mxu0 %v4972_v20  ;;  %v5005_v20 = vld [vmem:[#allocation6 + $0x1fc] ss:$12 sps:$4 sm:$0xff]  }
 0x20e   :  { %4319 = vmatprep.subr.bf16.mxu0 %v4976_v21  ;;  %v5084_v21 = vld [vmem:[#allocation6 + $0x368] ss:$12 sps:$4 sm:$0xff]  }
 0x211   :  { %4320 = vmatpush3.bf16.msra.mxu0 %v4977_v24  ;;  %v5003_v24 = vld [vmem:[#allocation6 + $0x1f8] ss:$12 sps:$4 sm:$0xff]  }
 0x212   :  { %4321 = vmatprep.subr.bf16.mxu0 %v4981_v11  ;;  %v5008_v11 = vld [vmem:[#allocation6 + $0x214] ss:$12 sps:$4 sm:$0xff]  }
 0x215   :  { %4322 = vmatpush3.bf16.msra.mxu0 %v4982_v26  ;;  %v5006_v26 = vld [vmem:[#allocation6 + $0x210] ss:$12 sps:$4 sm:$0xff]  }
 0x216   :  { %4323 = vmatprep.subr.bf16.mxu0 %v4986_v50  ;;  %v5011_v50 = vld [vmem:[#allocation6 + $0x22c] ss:$12 sps:$4 sm:$0xff]  }
 0x219   :  { %4324 = vmatpush3.bf16.msra.mxu0 %v4987_v32  ;;  %v5014_v32 = vld [vmem:[#allocation6 + $0x244] ss:$12 sps:$4 sm:$0xff]  }
 0x21a   :  { %4353 = vmatprep.subr.bf16.mxu0 %v5063_v33  ;;  %v5012_v33 = vld [vmem:[#allocation6 + $0x240] ss:$12 sps:$4 sm:$0xff]  }
 0x21b   :  { %v1928_v39 = vpop.f32.mrb[0].mxu0 }
 0x21c   :  { %v2057_v40 = vpop.f32.mrb[0].mxu1  ;;  %v4455_v41 = vadd.f32 %v1928_v39, %v427_v34  ;;  %v1930_v43 = vpop.f32.mrb[1].mxu0  ;;  %v5023_v39 = vld [vmem:[#allocation6 + $0x28c] ss:$12 sps:$4 sm:$0xff]  }
 0x21d   :  { %v4459_v42 = vadd.f32 %v2057_v40, %v435_v35  ;;  %v2059_v44 = vpop.f32.mrb[1].mxu1  ;;  %v4456_v45 = vadd.f32 %v1930_v43, %v431_v37  ;;  %v1932_v47 = vpop.f32.mrb[2].mxu0  ;;  %v5089_v40 = vld [vmem:[#allocation6 + $0x380] ss:$12 sps:$4 sm:$0xff]   ;;  %v5093_v43 = vld [vmem:[#allocation6 + $0x458] ss:$12 sps:$4 sm:$0xff]  }
 0x21e   :  { %v4460_v46 = vadd.f32 %v2059_v44, %v439_v38  ;;  %v2061_v48 = vpop.f32.mrb[2].mxu1  ;;  %v4457_v51 = vadd.f32 %v1932_v47, %v427_v34  ;;  %v1934_v53 = vpop.f32.mrb[3].mxu0  ;;  %v2195_v57 = vmax.f32 %v4455_v41, 0.0  ;;  %v5017_v34 = vld [vmem:[#allocation6 + $0x25c] ss:$12 sps:$4 sm:$0xff]  }
 0x21f   :  { %v2197_v49 = vmax.f32 %v4459_v42, 0.0  ;;  %v4461_v52 = vadd.f32 %v2061_v48, %v435_v35  ;;  %v2063_v54 = vpop.f32.mrb[3].mxu1  ;;  %v4458_v55 = vadd.f32 %v1934_v53, %v431_v37  ;;  %v2196_v60 = vmax.f32 %v4456_v45, 0.0  ;;  %v5015_v35 = vld [vmem:[#allocation6 + $0x258] ss:$12 sps:$4 sm:$0xff]  }
 0x220   :  { %v4462_v56 = vadd.f32 %v2063_v54, %v439_v38  ;;  %v2201_v58 = vmax.f32 %v4457_v51, 0.0  ;;  %v2198_v17 = vmax.f32 %v4460_v46, 0.0  ;;  %v5020_v37 = vld [vmem:[#allocation6 + $0x274] ss:$12 sps:$4 sm:$0xff]   ;;  %v5018_v38 = vld [vmem:[#allocation6 + $0x270] ss:$12 sps:$4 sm:$0xff]  }
 0x221   :  { %v2203_v59 = vmax.f32 %v4461_v52, 0.0  ;;  %v2202_v61 = vmax.f32 %v4458_v55, 0.0  ;;  %v5021_v41 = vld [vmem:[#allocation6 + $0x288] ss:$12 sps:$4 sm:$0xff]   ;;  %v5026_v42 = vld [vmem:[#allocation6 + $0x2a4] ss:$12 sps:$4 sm:$0xff]  }
 0x222   :  { %v2204_v22 = vmax.f32 %v4462_v56, 0.0  ;;  %v2207_v62 = vpack.c.bf16 %v2201_v58, %v2195_v57  ;;  %v5094_v44 = vld [vmem:[#allocation6 + $0x398] ss:$12 sps:$4 sm:$0xff]   ;;  %v5024_v45 = vld [vmem:[#allocation6 + $0x2a0] ss:$12 sps:$4 sm:$0xff]  }
 0x223   :  { %v5590_v63 = vpack.c.bf16 %v2203_v59, %v2197_v49  ;;  %v2208_v0 = vpack.c.bf16 %v2202_v61, %v2196_v60  ;;  %v5029_v46 = vld [vmem:[#allocation6 + $0x2bc] ss:$12 sps:$4 sm:$0xff]   ;;  %v5027_v49 = vld [vmem:[#allocation6 + $0x2b8] ss:$12 sps:$4 sm:$0xff]   ;;  %v5032_v51 = vld [vmem:[#allocation6 + $0x2d4] ss:$12 sps:$4 sm:$0xff]  }
 0x224   :  { %v5592_v1 = vpack.c.bf16 %v2204_v22, %v2198_v17  ;;  %v5098_v47 = vld [vmem:[#allocation6 + $0x470] ss:$12 sps:$4 sm:$0xff]   ;;  %v5035_v53 = vld [vmem:[#allocation6 + $0x2ec] ss:$12 sps:$4 sm:$0xff]   ;;  %v5033_v54 = vld [vmem:[#allocation6 + $0x2e8] ss:$12 sps:$4 sm:$0xff]  }
 0x225   :  { %3222 = vmatprep.mubr.bf16.mxu1 %v2208_v0  ;;  %3351 = vmatprep.mubr.bf16.mxu0 %v2208_v0  ;;  %v5099_v48 = vld [vmem:[#allocation6 + $0x3b0] ss:$12 sps:$4 sm:$0xff]   ;;  %v5036_v56 = vld [vmem:[#allocation6 + $0x300] ss:$12 sps:$4 sm:$0xff]   ;;  %v5039_v58 = vld [vmem:[#allocation6 + $0x318] ss:$12 sps:$4 sm:$0xff]  }
 0x226   :  { %3223 = vmatmul.mubr.bf16.vlgmr.msra.gmra.mrb[4].mxu1 %v2207_v62  ;;  %3352 = vmatmul.mubr.bf16.vlgmr.msra.gmra.mrb[8].mxu0 %v2207_v62  ;;  %v5030_v52 = vld [vmem:[#allocation6 + $0x2d0] ss:$12 sps:$4 sm:$0xff]   ;;  %v5044_v59 = vld [vmem:[#allocation6 + $0x334] ss:$12 sps:$4 sm:$0xff]   ;;  %v5047_v17 = vld [vmem:[#allocation6 + $0x34c] ss:$12 sps:$4 sm:$0xff]  }
 0x227   :  { %3234 = vmatpush1.bf16.msra.mxu1 %v4988_v2  ;;  %3265 = vmatprep.mubr.bf16.mxu1 %v5592_v1  ;;  %v5038_v55 = vld [vmem:[#allocation6 + $0x304] ss:$12 sps:$4 sm:$0xff]   ;;  %v5041_v57 = vld [vmem:[#allocation6 + $0x31c] ss:$12 sps:$4 sm:$0xff]   ;;  %v5048_v62 = vld [vmem:[#allocation6 + $0x360] ss:$12 sps:$4 sm:$0xff]  }
 0x228   :  { %3235 = vmatprep.subr.bf16.mxu1 %v4993_v3  ;;  %4354 = vmatpush3.bf16.msra.mxu0 %v5064_v4  ;;  %v5042_v60 = vld [vmem:[#allocation6 + $0x330] ss:$12 sps:$4 sm:$0xff]   ;;  %v5045_v61 = vld [vmem:[#allocation6 + $0x348] ss:$12 sps:$4 sm:$0xff]   ;;  %v5051_v2 = vld [vmem:[#allocation6 + $0x378] ss:$12 sps:$4 sm:$0xff]  }
 0x229   :  { %4355 = vmatprep.subr.bf16.mxu0 %v5068_v5  ;;  %v5050_v22 = vld [vmem:[#allocation6 + $0x364] ss:$12 sps:$4 sm:$0xff]   ;;  %v5053_v0 = vld [vmem:[#allocation6 + $0x37c] ss:$12 sps:$4 sm:$0xff]   ;;  %v5056_v3 = vld [vmem:[#allocation6 + $0x394] ss:$12 sps:$4 sm:$0xff]  }
 0x22a   :  { %v5054_v4 = vld [vmem:[#allocation6 + $0x390] ss:$12 sps:$4 sm:$0xff]   ;;  %v5059_v5 = vld [vmem:[#allocation6 + $0x3ac] ss:$12 sps:$4 sm:$0xff]  }
 0x22b   :  { %3236 = vmatpush1.bf16.msra.mxu1 %v4991_v6  ;;  %v5057_v6 = vld [vmem:[#allocation6 + $0x3a8] ss:$12 sps:$4 sm:$0xff]  }
 0x22c   :  { %3237 = vmatprep.subr.bf16.mxu1 %v4996_v7  ;;  %4356 = vmatpush3.bf16.msra.mxu0 %v5069_v8  ;;  %v5062_v7 = vld [vmem:[#allocation6 + $0x3c4] ss:$12 sps:$4 sm:$0xff]   ;;  %v5060_v8 = vld [vmem:[#allocation6 + $0x3c0] ss:$12 sps:$4 sm:$0xff]  }
 0x22d   :  { %4357 = vmatprep.subr.bf16.mxu0 %v5073_v10  ;;  %v5067_v10 = vld [vmem:[#allocation6 + $0x3dc] ss:$12 sps:$4 sm:$0xff]  }
 0x22f   :  { %3238 = vmatpush1.bf16.msra.mxu1 %v4994_v12  ;;  %v5065_v12 = vld [vmem:[#allocation6 + $0x3d8] ss:$12 sps:$4 sm:$0xff]  }
 0x230   :  { %3239 = vmatprep.subr.bf16.mxu1 %v4999_v13  ;;  %4358 = vmatpush3.bf16.msra.mxu0 %v5074_v14  ;;  %v5072_v13 = vld [vmem:[#allocation6 + $0x3f4] ss:$12 sps:$4 sm:$0xff]   ;;  %v5070_v14 = vld [vmem:[#allocation6 + $0x3f0] ss:$12 sps:$4 sm:$0xff]  }
 0x231   :  { %4359 = vmatprep.subr.bf16.mxu0 %v5078_v15  ;;  %v5077_v15 = vld [vmem:[#allocation6 + $0x40c] ss:$12 sps:$4 sm:$0xff]  }
 0x233   :  { %3240 = vmatpush1.bf16.msra.mxu1 %v4997_v16  ;;  %v5075_v16 = vld [vmem:[#allocation6 + $0x408] ss:$12 sps:$4 sm:$0xff]  }
 0x234   :  { %3241 = vmatprep.subr.bf16.mxu1 %v5002_v9  ;;  %4360 = vmatpush3.bf16.msra.mxu0 %v5079_v18  ;;  %v5082_v9 = vld [vmem:[#allocation6 + $0x424] ss:$12 sps:$4 sm:$0xff]   ;;  %v5080_v18 = vld [vmem:[#allocation6 + $0x420] ss:$12 sps:$4 sm:$0xff]  }
 0x235   :  { %4361 = vmatprep.subr.bf16.mxu0 %v5083_v36  ;;  %v5087_v36 = vld [vmem:[#allocation6 + $0x43c] ss:$12 sps:$4 sm:$0xff]  }
 0x237   :  { %3242 = vmatpush1.bf16.msra.mxu1 %v5000_v19  ;;  %v5085_v19 = vld [vmem:[#allocation6 + $0x438] ss:$12 sps:$4 sm:$0xff]  }
 0x238   :  { %3243 = vmatprep.subr.bf16.mxu1 %v5005_v20  ;;  %4362 = vmatpush3.bf16.msra.mxu0 %v5084_v21  ;;  %v5092_v20 = vld [vmem:[#allocation6 + $0x454] ss:$12 sps:$4 sm:$0xff]   ;;  %v5090_v21 = vld [vmem:[#allocation6 + $0x450] ss:$12 sps:$4 sm:$0xff]  }
 0x239   :  { %4363 = vmatprep.subr.bf16.mxu0 %v5088_v23  ;;  %v5097_v23 = vld [vmem:[#allocation6 + $0x46c] ss:$12 sps:$4 sm:$0xff]  }
 0x23b   :  { %3244 = vmatpush1.bf16.msra.mxu1 %v5003_v24  ;;  %v5095_v24 = vld [vmem:[#allocation6 + $0x468] ss:$12 sps:$4 sm:$0xff]  }
 0x23c   :  { %3245 = vmatprep.subr.bf16.mxu1 %v5008_v11  ;;  %4364 = vmatpush3.bf16.msra.mxu0 %v5089_v40  ;;  %v5100_v11 = vld [vmem:[#allocation6 + $0x248] ss:$12 sps:$4 sm:$0xff]  }
 0x23d   :  { %4365 = vmatprep.subr.bf16.mxu0 %v5093_v43 }
 0x23f   :  { %3246 = vmatpush1.bf16.msra.mxu1 %v5006_v26  ;;  %v442_v26 = vsub.s32 4, %v5572_v25 }
 0x240   :  { %3247 = vmatprep.subr.bf16.mxu1 %v5011_v50  ;;  %4366 = vmatpush3.bf16.msra.mxu0 %v5094_v44  ;;  %v446_v50 = vsub.s32 5, %v5572_v25  ;;  %v5140_v25 = vld [vmem:[#allocation12] sm:$0xff]  }
 0x241   :  { %4367 = vmatprep.subr.bf16.mxu0 %v5098_v47 }
 0x243   :  { %3248 = vmatpush1.bf16.msra.mxu1 %v5009_v31  ;;  %v443_v31 = vrot.slane %v5576_v29, %v442_v26  ;;  %v5136_v26 = vld [vmem:[#allocation9 + $0xa0] sm:$0xff]  }
 0x244   :  { %3249 = vmatprep.subr.bf16.mxu1 %v5014_v32  ;;  %4368 = vmatpush3.bf16.msra.mxu0 %v5099_v48  ;;  %v447_v32 = vrot.slane %v5576_v29, %v446_v50  ;;  %v5101_v48 = vld [vmem:[#allocation6 + $0x188] ss:$12 sps:$4 sm:$0xff]   ;;  %v5103_v29 = vld [vmem:[#allocation6 + $0x1a0] ss:$12 sps:$4 sm:$0xff]  }
 0x245   :  { %v5137_v50 = vld [vmem:[#allocation9 + $0xa8] sm:$0xff]  }
 0x247   :  { %3250 = vmatpush1.bf16.msra.mxu1 %v5012_v33 }
 0x248   :  { %3251 = vmatprep.subr.bf16.mxu1 %v5017_v34 }
 0x24b   :  { %3252 = vmatpush1.bf16.msra.mxu1 %v5015_v35 }
 0x24c   :  { %3253 = vmatprep.subr.bf16.mxu1 %v5020_v37 }
 0x24f   :  { %3254 = vmatpush1.bf16.msra.mxu1 %v5018_v38 }
 0x250   :  { %3255 = vmatprep.subr.bf16.mxu1 %v5023_v39 }
 0x253   :  { %3256 = vmatpush1.bf16.msra.mxu1 %v5021_v41 }
 0x254   :  { %3257 = vmatprep.subr.bf16.mxu1 %v5026_v42 }
 0x257   :  { %3258 = vmatpush1.bf16.msra.mxu1 %v5024_v45 }
 0x258   :  { %3259 = vmatprep.subr.bf16.mxu1 %v5029_v46 }
 0x25b   :  { %3260 = vmatpush1.bf16.msra.mxu1 %v5027_v49  ;;  %v5102_v49 = vld [vmem:[#allocation6 + $0x260] ss:$12 sps:$4 sm:$0xff]  }
 0x25c   :  { %3261 = vmatprep.subr.bf16.mxu1 %v5032_v51  ;;  %v5104_v51 = vld [vmem:[#allocation6 + $0x278] ss:$12 sps:$4 sm:$0xff]  }
 0x25f   :  { %3262 = vmatpush1.bf16.msra.mxu1 %v5030_v52  ;;  %v5105_v52 = vld [vmem:[#allocation6 + $0x1b8] ss:$12 sps:$4 sm:$0xff]  }
 0x260   :  { %3263 = vmatprep.subr.bf16.mxu1 %v5035_v53  ;;  %v5106_v53 = vld [vmem:[#allocation6 + $0x290] ss:$12 sps:$4 sm:$0xff]  }
 0x263   :  { %3264 = vmatpush1.bf16.msra.mxu1 %v5033_v54  ;;  %v5107_v54 = vld [vmem:[#allocation6 + $0x1d0] ss:$12 sps:$4 sm:$0xff]  }
 0x264   :  { %3276 = vmatprep.subr.bf16.mxu1 %v5038_v55  ;;  %v5108_v55 = vld [vmem:[#allocation6 + $0x2a8] ss:$12 sps:$4 sm:$0xff]  }
 0x266   :  { %3266 = vmatmul.mubr.bf16.vlgmr.msra.gmra.mrb[4].mxu1 %v5590_v63 }
 0x267   :  { %3277 = vmatpush1.bf16.msra.mxu1 %v5036_v56  ;;  %v5109_v56 = vld [vmem:[#allocation6 + $0x1e8] ss:$12 sps:$4 sm:$0xff]  }
 0x268   :  { %3278 = vmatprep.subr.bf16.mxu1 %v5041_v57  ;;  %v5110_v57 = vld [vmem:[#allocation6 + $0x2c0] ss:$12 sps:$4 sm:$0xff]  }
 0x26b   :  { %3279 = vmatpush1.bf16.msra.mxu1 %v5039_v58  ;;  %v5111_v58 = vld [vmem:[#allocation6 + $0x200] ss:$12 sps:$4 sm:$0xff]  }
 0x26c   :  { %3280 = vmatprep.subr.bf16.mxu1 %v5044_v59  ;;  %v5112_v59 = vld [vmem:[#allocation6 + $0x2d8] ss:$12 sps:$4 sm:$0xff]  }
 0x26f   :  { %3281 = vmatpush1.bf16.msra.mxu1 %v5042_v60  ;;  %v5114_v60 = vld [vmem:[#allocation6 + $0x2f0] ss:$12 sps:$4 sm:$0xff]  }
 0x270   :  { %3282 = vmatprep.subr.bf16.mxu1 %v5047_v17  ;;  %v5115_v17 = vld [vmem:[#allocation6 + $0x230] ss:$12 sps:$4 sm:$0xff]  }
 0x273   :  { %3283 = vmatpush1.bf16.msra.mxu1 %v5045_v61  ;;  %v5116_v61 = vld [vmem:[#allocation9 + $0x40] sm:$0xff]  }
 0x274   :  { %3284 = vmatprep.subr.bf16.mxu1 %v5050_v22  ;;  %v5117_v22 = vld [vmem:[#allocation9] sm:$0xff]  }
 0x277   :  { %3285 = vmatpush1.bf16.msra.mxu1 %v5048_v62  ;;  %v5118_v62 = vld [vmem:[#allocation9 + $0x48] sm:$0xff]  }
 0x278   :  { %3286 = vmatprep.subr.bf16.mxu1 %v5053_v0 }
 0x27b   :  { %3287 = vmatpush1.bf16.msra.mxu1 %v5051_v2 }
 0x27c   :  { %3288 = vmatprep.subr.bf16.mxu1 %v5056_v3 }
 0x27f   :  { %3289 = vmatpush1.bf16.msra.mxu1 %v5054_v4 }
 0x280   :  { %3290 = vmatprep.subr.bf16.mxu1 %v5059_v5  ;;  %v5119_v5 = vld [vmem:[#allocation9 + $0x8] sm:$0xff]  }
 0x283   :  { %3291 = vmatpush1.bf16.msra.mxu1 %v5057_v6 }
 0x284   :  { %3292 = vmatprep.subr.bf16.mxu1 %v5062_v7  ;;  %v5120_v7 = vld [vmem:[#allocation9 + $0x50] sm:$0xff]  }
 0x287   :  { %3293 = vmatpush1.bf16.msra.mxu1 %v5060_v8 }
 0x288   :  { %3294 = vmatprep.subr.bf16.mxu1 %v5067_v10  ;;  %v5121_v10 = vld [vmem:[#allocation9 + $0x10] sm:$0xff]  }
 0x28b   :  { %3295 = vmatpush1.bf16.msra.mxu1 %v5065_v12  ;;  %v5122_v12 = vld [vmem:[#allocation9 + $0x58] sm:$0xff]  }
 0x28c   :  { %3296 = vmatprep.subr.bf16.mxu1 %v5072_v13  ;;  %v5123_v13 = vld [vmem:[#allocation9 + $0x18] sm:$0xff]  }
 0x28f   :  { %3297 = vmatpush1.bf16.msra.mxu1 %v5070_v14  ;;  %v5124_v14 = vld [vmem:[#allocation9 + $0x60] sm:$0xff]  }
 0x290   :  { %3298 = vmatprep.subr.bf16.mxu1 %v5077_v15  ;;  %v5126_v15 = vld [vmem:[#allocation9 + $0x68] sm:$0xff]  }
 0x293   :  { %3299 = vmatpush1.bf16.msra.mxu1 %v5075_v16  ;;  %v5127_v16 = vld [vmem:[#allocation9 + $0x28] sm:$0xff]  }
 0x294   :  { %3300 = vmatprep.subr.bf16.mxu1 %v5082_v9  ;;  %v5128_v9 = vld [vmem:[#allocation9 + $0x70] sm:$0xff]  }
 0x297   :  { %3301 = vmatpush1.bf16.msra.mxu1 %v5080_v18  ;;  %v5129_v18 = vld [vmem:[#allocation9 + $0x30] sm:$0xff]  }
 0x298   :  { %3302 = vmatprep.subr.bf16.mxu1 %v5087_v36  ;;  %v5130_v36 = vld [vmem:[#allocation9 + $0x78] sm:$0xff]  }
 0x29b   :  { %3303 = vmatpush1.bf16.msra.mxu1 %v5085_v19  ;;  %v5131_v19 = vld [vmem:[#allocation9 + $0x38] sm:$0xff]  }
 0x29c   :  { %3304 = vmatprep.subr.bf16.mxu1 %v5092_v20  ;;  %v5132_v20 = vld [vmem:[#allocation9 + $0x80] sm:$0xff]  }
 0x29f   :  { %3305 = vmatpush1.bf16.msra.mxu1 %v5090_v21  ;;  %v5348_v21 = vmov 0.0  }
 0x2a0   :  { %3306 = vmatprep.subr.bf16.mxu1 %v5097_v23  ;;  %4415 = vmatprep.subr.bf16.mxu0 %v5348_v21  ;;  %v5133_v23 = vld [vmem:[#allocation9 + $0x88] sm:$0xff]  }
 0x2a3   :  { %3307 = vmatpush1.bf16.msra.mxu1 %v5095_v24  ;;  %v5134_v24 = vld [vmem:[#allocation9 + $0x90] sm:$0xff]  }
 0x2a4   :  { %4331 = vmatprep.subr.bf16.mxu1 %v5100_v11  ;;  %v5135_v11 = vld [vmem:[#allocation9 + $0x98] sm:$0xff]  }
 0x2cf   :  { %v2186_v33 = vpop.f32.mrb[4].mxu0 }
 0x2d0   :  { %v4463_v34 = vadd.f32 %v2186_v33, %v443_v31  ;;  %v2188_v35 = vpop.f32.mrb[5].mxu0  ;;  %v2405_v33 = vld [vmem:[#allocation7] sm:$0x7] }
 0x2d1   :  { %v4464_v37 = vadd.f32 %v2188_v35, %v447_v32  ;;  %v2190_v38 = vpop.f32.mrb[6].mxu0  ;;  %v2414_v35 = vrot.slane %v2405_v33, %v430_v30 }
 0x2d2   :  { %v4465_v39 = vadd.f32 %v2190_v38, %v443_v31  ;;  %v2192_v40 = vpop.f32.mrb[7].mxu0  ;;  %v2199_v42 = vmax.f32 %v4463_v34, 0.0  ;;  %v5138_v31 = vld [vmem:[#allocation9 + $0xb0] sm:$0xff]   ;;  %v2410_v34 = vrot.slane %v2405_v33, %v426_v27 }
 0x2d3   :  { %v4466_v41 = vadd.f32 %v2192_v40, %v447_v32  ;;  %v2200_v44 = vmax.f32 %v4464_v37, 0.0  ;;  %v5139_v32 = vld [vmem:[#allocation9 + $0xb8] sm:$0xff]  }
 0x2d4   :  { %v2205_v43 = vmax.f32 %v4465_v39, 0.0 }
 0x2d5   :  { %v2206_v45 = vmax.f32 %v4466_v41, 0.0 }
 0x2d6   :  { %v2211_v46 = vpack.c.bf16 %v2205_v43, %v2199_v42 }
 0x2d7   :  { %v2212_v47 = vpack.c.bf16 %v2206_v45, %v2200_v44 }
 0x2d9   :  { %3308 = vmatprep.mubr.bf16.mxu1 %v2212_v47  ;;  %3433 = vmatprep.mubr.bf16.mxu0 %v2212_v47 }
 0x2da   :  { %3309 = vmatmul.mubr.bf16.vlgmr.msra.gmra.mrb[4].mxu1 %v2211_v46  ;;  %3434 = vmatmul.mubr.bf16.vlgmr.msra.gmra.mrb[12].mxu0 %v2211_v46 }
 0x2db   :  { %4332 = vmatpush3.bf16.msra.mxu1 %v5101_v48  ;;  %3392 = vmatprep.mubr.bf16.mxu1 %v5592_v1  ;;  %v5113_v1 = vld [vmem:[#allocation6 + $0x218] ss:$12 sps:$4 sm:$0xff]  }
 0x2dc   :  { %4333 = vmatprep.subr.bf16.mxu1 %v5102_v49  ;;  %4416 = vmatpush3.bf16.msra.mxu0 %v5132_v20 }
 0x2dd   :  { %4417 = vmatprep.subr.bf16.mxu0 %v5348_v21  ;;  %4431 = vmatprep.mubr.msk.bf16.mxu0 %vm5349_vm1, %v5348_v21 }
 0x2df   :  { %4334 = vmatpush3.bf16.msra.mxu1 %v5103_v29 }
 0x2e0   :  { %4335 = vmatprep.subr.bf16.mxu1 %v5104_v51  ;;  %4418 = vmatpush3.bf16.msra.mxu0 %v5133_v23 }
 0x2e1   :  { %4419 = vmatprep.subr.bf16.mxu0 %v5348_v21 }
 0x2e3   :  { %4336 = vmatpush3.bf16.msra.mxu1 %v5105_v52 }
 0x2e4   :  { %4337 = vmatprep.subr.bf16.mxu1 %v5106_v53  ;;  %4420 = vmatpush3.bf16.msra.mxu0 %v5134_v24 }
 0x2e5   :  { %4421 = vmatprep.subr.bf16.mxu0 %v5348_v21 }
 0x2e7   :  { %4338 = vmatpush3.bf16.msra.mxu1 %v5107_v54 }
 0x2e8   :  { %4339 = vmatprep.subr.bf16.mxu1 %v5108_v55  ;;  %4422 = vmatpush3.bf16.msra.mxu0 %v5135_v11  ;;  %v2418_v55 = vrot.slane %v2405_v33, %v434_v28  ;;  %v5141_v28 = vld [vmem:[#allocation12 + $0x8] sm:$0xff]  }
 0x2e9   :  { %4423 = vmatprep.subr.bf16.mxu0 %v5348_v21 }
 0x2eb   :  { %4340 = vmatpush3.bf16.msra.mxu1 %v5109_v56 }
 0x2ec   :  { %4341 = vmatprep.subr.bf16.mxu1 %v5110_v57  ;;  %4424 = vmatpush3.bf16.msra.mxu0 %v5136_v26 }
 0x2ed   :  { %4425 = vmatprep.subr.bf16.mxu0 %v5348_v21 }
 0x2ef   :  { %4342 = vmatpush3.bf16.msra.mxu1 %v5111_v58 }
 0x2f0   :  { %4343 = vmatprep.subr.bf16.mxu1 %v5112_v59  ;;  %4426 = vmatpush3.bf16.msra.mxu0 %v5137_v50 }
 0x2f1   :  { %4427 = vmatprep.subr.bf16.mxu0 %v5348_v21 }
 0x2f3   :  { %4344 = vmatpush3.bf16.msra.mxu1 %v5113_v1 }
 0x2f4   :  { %4345 = vmatprep.subr.bf16.mxu1 %v5114_v60  ;;  %4428 = vmatpush3.bf16.msra.mxu0 %v5138_v31 }
 0x2f5   :  { %4429 = vmatprep.subr.bf16.mxu0 %v5348_v21 }
 0x2f7   :  { %4346 = vmatpush3.bf16.msra.mxu1 %v5115_v17 }
 0x2f8   :  { %4375 = vmatprep.subr.bf16.mxu1 %v5116_v61  ;;  %4430 = vmatpush3.bf16.msra.mxu0 %v5139_v32 }
 0x2f9   :  { %v4325_v0 = vpop.f32.mrb[8].mxu0 }
 0x2fa   :  { %3393 = vmatmul.mubr.bf16.vlgmr.msra.gmra.mrb[8].mxu1 %v5590_v63  ;;  %v4326_v2 = vpop.f32.mrb[9].mxu0  ;;  %v5125_v63 = vld [vmem:[#allocation9 + $0x20] sm:$0xff]  }
 0x2fb   :  { %v5602_v3 = vadd.f32 %v4326_v2, %v4325_v0  ;;  %v4328_v4 = vpop.f32.mrb[10].mxu0  ;;  %4376 = vmatpush3.bf16.msra.mxu1 %v5117_v22 }
 0x2fc   :  { %v4329_v6 = vpop.f32.mrb[11].mxu0  ;;  %4377 = vmatprep.subr.bf16.mxu1 %v5118_v62 }
 0x2fd   :  { %v5604_v8 = vadd.f32 %v4329_v6, %v4328_v4  ;;  %v3354_v58 = vadd.f32 %v5602_v3, %v2418_v55  ;;  %v5142_v3 = vld [vmem:[#allocation12 + $0x10] sm:$0xff]  }
 0x2ff   :  { %4378 = vmatpush3.bf16.msra.mxu1 %v5119_v5  ;;  %v3357_v17 = vadd.f32 %v5604_v8, %v2418_v55  ;;  %v5144_v8 = vld [vmem:[#allocation12 + $0x20] sm:$0xff]  }
 0x300   :  { %4379 = vmatprep.subr.bf16.mxu1 %v5120_v7  ;;  %v5143_v7 = vld [vmem:[#allocation12 + $0x18] sm:$0xff]  }
 0x303   :  { %4380 = vmatpush3.bf16.msra.mxu1 %v5121_v10  ;;  %v5145_v10 = vld [vmem:[#allocation12 + $0x28] sm:$0xff]  }
 0x304   :  { %4381 = vmatprep.subr.bf16.mxu1 %v5122_v12  ;;  %v5146_v12 = vld [vmem:[#allocation12 + $0x30] sm:$0xff]  }
 0x307   :  { %4382 = vmatpush3.bf16.msra.mxu1 %v5123_v13  ;;  %v5147_v13 = vld [vmem:[#allocation12 + $0x38] sm:$0xff]  }
 0x308   :  { %4383 = vmatprep.subr.bf16.mxu1 %v5124_v14 }
 0x30b   :  { %4384 = vmatpush3.bf16.msra.mxu1 %v5125_v63 }
 0x30c   :  { %4385 = vmatprep.subr.bf16.mxu1 %v5126_v15 }
 0x30f   :  { %4386 = vmatpush3.bf16.msra.mxu1 %v5127_v16 }
 0x310   :  { %4387 = vmatprep.subr.bf16.mxu1 %v5128_v9 }
 0x313   :  { %4388 = vmatpush3.bf16.msra.mxu1 %v5129_v18 }
 0x314   :  { %4389 = vmatprep.subr.bf16.mxu1 %v5130_v36  ;;  %v4275_v36 = vld [vmem:[#allocation10] ss:$0 sm:$0xff] }
 0x317   :  { %4390 = vmatpush3.bf16.msra.mxu1 %v5131_v19 }
 0x318   :  { %4435 = vmatprep.subr.bf16.mxu1 %v5348_v21 }
 0x3ad   :  { %v3310_v37 = vpop.f32.mrb[4].mxu1  ;;  %v4369_v38 = vpop.f32.mrb[12].mxu0 }
 0x3ae   :  { %v4467_v39 = vadd.f32 %v3310_v37, %v2410_v34  ;;  %v3312_v40 = vpop.f32.mrb[5].mxu1  ;;  %v4370_v41 = vpop.f32.mrb[13].mxu0 }
 0x3af   :  { %v4468_v42 = vadd.f32 %v3312_v40, %v2414_v35  ;;  %v4371_v43 = vadd.f32 %v4370_v41, %v4369_v38  ;;  %v3314_v44 = vpop.f32.mrb[6].mxu1  ;;  %v4372_v45 = vpop.f32.mrb[14].mxu0 }
 0x3b0   :  { %v4469_v46 = vadd.f32 %v3314_v44, %v2410_v34  ;;  %v3316_v47 = vpop.f32.mrb[7].mxu1  ;;  %v4373_v48 = vpop.f32.mrb[15].mxu0  ;;  %v3442_v51 = vmax.f32 %v4467_v39, 0.0  ;;  %v4300_v34 = vld [vmem:[#allocation13] ss:$0 sm:$0xff] }
 0x3b1   :  { %v4470_v49 = vadd.f32 %v3316_v47, %v2414_v35  ;;  %v4374_v29 = vadd.f32 %v4373_v48, %v4372_v45  ;;  %v3443_v27 = vmax.f32 %v4468_v42, 0.0 }
 0x3b2   :  { %v3445_v52 = vmax.f32 %v4469_v46, 0.0 }
 0x3b3   :  { %v3446_v53 = vmax.f32 %v4470_v49, 0.0 }
 0x3b4   :  { %v3448_v54 = vpack.c.bf16 %v3445_v52, %v3442_v51 }
 0x3b5   :  { %v3449_v30 = vpack.c.bf16 %v3446_v53, %v3443_v27 }
 0x3b7   :  { %3682 = vmatprep.mubr.bf16.mxu1 %v3449_v30 }
 0x3b8   :  { %3683 = vmatmul.mubr.bf16.vlgmr.msra.gmra.mrb[12].mxu1 %v3448_v54 }
 0x3b9   :  { %4451 = vmatprep.mubr.msk.bf16.mxu1 %vm5349_vm1, %v5348_v21  ;;  %4436 = vmatpush3.bf16.msra.mxu1 %v5140_v25 }
 0x3ba   :  { %4437 = vmatprep.subr.bf16.mxu1 %v5348_v21 }
 0x3bd   :  { %4438 = vmatpush3.bf16.msra.mxu1 %v5141_v28 }
 0x3be   :  { %4439 = vmatprep.subr.bf16.mxu1 %v5348_v21 }
 0x3c1   :  { %4440 = vmatpush3.bf16.msra.mxu1 %v5142_v3 }
 0x3c2   :  { %4441 = vmatprep.subr.bf16.mxu1 %v5348_v21 }
 0x3c5   :  { %4442 = vmatpush3.bf16.msra.mxu1 %v5143_v7 }
 0x3c6   :  { %4443 = vmatprep.subr.bf16.mxu1 %v5348_v21 }
 0x3c9   :  { %4444 = vmatpush3.bf16.msra.mxu1 %v5144_v8 }
 0x3ca   :  { %4445 = vmatprep.subr.bf16.mxu1 %v5348_v21 }
 0x3cd   :  { %v4347_v56 = vpop.f32.mrb[8].mxu1  ;;  %4446 = vmatpush3.bf16.msra.mxu1 %v5145_v10 }
 0x3ce   :  { %v4348_v57 = vpop.f32.mrb[9].mxu1  ;;  %4447 = vmatprep.subr.bf16.mxu1 %v5348_v21 }
 0x3cf   :  { %v4349_v59 = vadd.f32 %v4348_v57, %v4347_v56  ;;  %v4350_v1 = vpop.f32.mrb[10].mxu1 }
 0x3d0   :  { %v4351_v60 = vpop.f32.mrb[11].mxu1 }
 0x3d1   :  { %v3395_v61 = vadd.f32 %v4349_v59, %v3354_v58  ;;  %v4352_v22 = vadd.f32 %v4351_v60, %v4350_v1  ;;  %4448 = vmatpush3.bf16.msra.mxu1 %v5146_v12 }
 0x3d2   :  { %4449 = vmatprep.subr.bf16.mxu1 %v5348_v21 }
 0x3d3   :  { %v3436_v62 = vadd.f32 %v4371_v43, %v3395_v61  ;;  %v3398_v0 = vadd.f32 %v4352_v22, %v3357_v17 }
 0x3d5   :  { %v3439_v2 = vadd.f32 %v4374_v29, %v3398_v0  ;;  %v3444_v4 = vmax.f32 %v3436_v62, 0.0  ;;  %4450 = vmatpush3.bf16.msra.mxu1 %v5147_v13 }
 0x3d7   :  { %v3447_v5 = vmax.f32 %v3439_v2, 0.0 }
 0x3d9   :  { %v3450_v6 = vpack.c.bf16 %v3447_v5, %v3444_v4 }
 0x3db   :  { %4432 = vmatmul.mubr.bf16.vlgmr.msra.gmra.mrb[16].mxu0 %v3450_v6 }
 0x48b   :  { %v4391_v14 = vpop.f32.mrb[12].mxu1 }
 0x48c   :  { %v4392_v63 = vpop.f32.mrb[13].mxu1 }
 0x48d   :  { %v4393_v15 = vadd.f32 %v4392_v63, %v4391_v14  ;;  %v4394_v16 = vpop.f32.mrb[14].mxu1 }
 0x48e   :  { %v4395_v9 = vpop.f32.mrb[15].mxu1 }
 0x48f   :  { %v4396_v18 = vadd.f32 %v4395_v9, %v4394_v16  ;;  %v3685_v19 = vadd.f32 %v4393_v15, %v4275_v36 }
 0x491   :  { %v3688_v11 = vadd.f32 %v4396_v18, %v4275_v36 }
 0x4ae   :  { %v3725_v20 = vpop.f32.mrb[16].mxu0 }
 0x4af   :  { %v3726_v23 = vadd.f32 %v3725_v20, %v3685_v19  ;;  %v4433_v24 = vpop.f32.mrb[17].mxu0 }
 0x4b0   :  { %v3728_v26 = vpop.f32.mrb[18].mxu0 }
 0x4b1   :  { %v3729_v50 = vadd.f32 %v3728_v26, %v3688_v11  ;;  %v4434_v31 = vpop.f32.mrb[19].mxu0  ;;  %v3732_v32 = vmax.f32 %v3726_v23, 0.0 }
 0x4b3   :  { %v3733_v33 = vmax.f32 %v3729_v50, 0.0 }
 0x4b5   :  { %v3734_v21 = vpack.c.bf16 %v3733_v33, %v3732_v32 }
 0x4b7   :  { %4452 = vmatmul.mubr.bf16.vlgmr.msra.gmra.mrb[16].mxu1 %v3734_v21 }
 0x58a   :  { %v3840_v35 = vpop.f32.mrb[16].mxu1 }
 0x58b   :  { %v3841_v37 = vadd.f32 %v4300_v34, %v3840_v35  ;;  %v4453_v38 = vpop.f32.mrb[17].mxu1 }
 0x58c   :  { %v3843_v39 = vpop.f32.mrb[18].mxu1 }
 0x58d   :  { %3847 = vst [vmem:[%s5649_s9] sm:$0xff] %v3841_v37  ;;  %v3844_v40 = vadd.f32 %v4300_v34, %v3843_v39  ;;  %v4454_v41 = vpop.f32.mrb[19].mxu1 }
 0x58f   :  { %3848 = vst [vmem:[%s5649_s9 + $0x8] sm:$0xff] %v3844_v40 }
 0x590   :  { %3853 = vsyncpa [#allocation3], 1 }
 0x591   :  { %3854 = vsyncpa [#allocation5], 1 }
 0x592   :  { %3855 = vsyncpa [#allocation8], 1 }
 0x593   :  { %3856 = vsyncpa [#allocation11], 1 }
 0x594   :  { %3857 = vsyncpa [#allocation14], 1 }

</bundles_post_ra>
